<compile_context>
chip_gen: v7x
topology: tpu7x:2x2x1
jax: 0.10.0
libtpu: 0.0.40
codegen_flags: <defaults>
</compile_context>

<pallas_src>
import jax
import jax.numpy as jnp
from jax.experimental import pallas as pl
from jax.experimental.pallas import tpu as pltpu

# ---------------- model hyper-parameters (small, deterministic) -------------
B = 2            # batch (molecules)
N_ATOMS = 8      # atoms per molecule
NODE_F = 16      # node_features
EDGE_F = 8       # edge_features
MSG_F = 16       # message_features
ADJ_D = 4        # adjacency_dim
OUT_D = 8        # output_dim
MSG_STEPS = 3    # message_steps (reference recomputes the same state each step)
S2V_STEPS = 3    # set2vec processing steps
READ_D = 2 * NODE_F          # cat([node_state, afm]) feature dim

NB = EDGE_F + 1              # edge-feature blocks + 1 virtual "ones" block

# ---- activation slab lane offsets (last dim = 136 lanes) -------------------
A_AFM = 0                      # [0:16)    atom features
A_ONE = A_AFM + NODE_F         # [16:24)   ones (virtual edge feature / b_att)
A_BFM = A_ONE + N_ATOMS        # [24:88)   bond features, lane = e*N + j
A_ADJ = A_BFM + EDGE_F * N_ATOMS   # [88:120)  adjacency, lane = a*N + j
A_MROW = A_ADJ + ADJ_D * N_ATOMS   # [120:128) mask over source atom j
A_MCOL = A_MROW + N_ATOMS      # [128:129) mask of atom i
ACT_LANES = 136

# ---- weight slab row offsets (128 lanes wide) -------------------------------
R_MSG = 0                      # (144, 16)  [b_edge ; w_edge blocks]
R_ATT = 144                    # (104, 16)  block-diag att/adj weights (+b_att)
R_EXP = 248                    # (8, 72)    kron(ones(1, NB), I_N) expansion
R_GRU = 256                    # (32, 96)   blockdiag(w_i, w_h)
R_LSTM = 288                   # (96, 128)  [w_li ; w_lh]
R_OUT = 384                    # (64, 128)  w_out zero-padded to 128 lanes
R_BGRU = 448                   # row: [b_i(48) | b_h(48)]
R_BL = 449                     # row: b_l (128)
R_BOUT = 450                   # row: b_out zero-padded to 128 lanes
W_ROWS = 456                   # padded to a multiple of 8


# =====================  fused forward kernel  ================================
def fused_mol_graph_kernel(act_ref, bd_ref, w_ref, out_ref):
    neg = jnp.float32(-1e9)
    N_, F_, M_, D_ = N_ATOMS, NODE_F, MSG_F, READ_D
    B_ = act_ref.shape[0]

    act = act_ref[...]                                     # (B, N, 136)
    afm3 = act[:, :, A_AFM:A_AFM + F_]                     # (B, N, F)
    mrow = act[:, :, A_MROW:A_MROW + N_]                   # (B, N, N) mask of src j
    mcol = act[:, :, A_MCOL:A_MCOL + 1]                    # (B, N, 1) mask of atom i
    afm2 = afm3.reshape(B_ * N_, F_)

    # ---- AttEdgeNetwork message matrix (w_edge contraction + b_edge term,
    # fused) via ONE matmul on the block-diagonal afm layout.
    w_msg = w_ref[R_MSG:R_MSG + NB * F_, 0:M_]             # (144, 16)
    c_aug = jnp.dot(bd_ref[...], w_msg,
                    preferred_element_type=jnp.float32
                    ).reshape(B_, NB * N_, M_)             # (B, 72, M)

    # ---- Edge-attention + adjacency-attention logits: ONE block-diag matmul
    # on lanes [ones | bfm | adj]; b_att is folded into the ones-block rows.
    logits_in = act[:, :, A_ONE:A_MROW].reshape(B_ * N_, A_MROW - A_ONE)   # (BN, 104)
    w_attadj = w_ref[R_ATT:R_ATT + (A_MROW - A_ONE), 0:2 * N_]             # (104, 16)
    both = jnp.dot(logits_in, w_attadj,
                   preferred_element_type=jnp.float32).reshape(B_, N_, 2 * N_)
    gate = jax.nn.sigmoid(both[:, :, 0:N_])                # (B, N, N)
    adj_logit = both[:, :, N_:2 * N_]                      # (B, N, N)

    # masked softmax over source atoms j
    adj_logit = jnp.where(mrow > 0.0, adj_logit, neg)
    adj_logit = adj_logit - jnp.max(adj_logit, axis=-1, keepdims=True)
    expw = jnp.where(mrow > 0.0, jnp.exp(adj_logit), 0.0)
    inv = pl.reciprocal(jnp.sum(expw, axis=-1, keepdims=True) + 1e-9, approx=True)
    wg = (expw * inv) * gate                               # (B, N, N)

    # ---- Replicate wg across the NB feature blocks on the MXU (no XLU concat)
    expand = w_ref[R_EXP:R_EXP + N_, 0:NB * N_]            # (N, 72)
    wg_rep = jnp.dot(wg.reshape(B_ * N_, N_), expand,
                     preferred_element_type=jnp.float32).reshape(B_, N_, NB * N_)

    # ---- Fused message + aggregation: one contraction over (block, src atom)
    lhs = act[:, :, A_ONE:A_ONE + NB * N_] * wg_rep        # (B, N, 72)
    agg = jnp.einsum('bil,blm->bim', lhs, c_aug,
                     preferred_element_type=jnp.float32)   # (B, N, M)

    # ---- GRU update: input & hidden projections in one block-diag matmul
    g_in = jnp.concatenate([agg.reshape(B_ * N_, M_), afm2], axis=-1)   # (BN, M+F)
    w_gru = w_ref[R_GRU:R_GRU + M_ + F_, 0:6 * F_]                      # (32, 96)
    g_cat = jnp.dot(g_in, w_gru, preferred_element_type=jnp.float32)    # (BN, 6F)
    b_i = w_ref[R_BGRU:R_BGRU + 1, 0:3 * F_]
    b_h = w_ref[R_BGRU:R_BGRU + 1, 3 * F_:6 * F_]
    gi = g_cat[:, 0:3 * F_] + b_i
    gh = g_cat[:, 3 * F_:6 * F_] + b_h
    r = jax.nn.sigmoid(gi[:, 0:F_] + gh[:, 0:F_])
    z = jax.nn.sigmoid(gi[:, F_:2 * F_] + gh[:, F_:2 * F_])
    nn_ = jnp.tanh(gi[:, 2 * F_:] + r * gh[:, 2 * F_:])
    h_new = (1.0 - z) * nn_ + z * afm2
    node_state = h_new.reshape(B_, N_, F_) * mcol          # (B, N, F)

    # ---- Set2Vec readout on x = cat([node_state, afm], -1)
    x = jnp.concatenate([node_state, afm3], axis=-1)       # (B, N, D)
    w_lstm = w_ref[R_LSTM:R_LSTM + 3 * D_, 0:4 * D_]       # (96, 128)
    b_l = w_ref[R_BL:R_BL + 1, 0:4 * D_]
    h = jnp.zeros((B_, D_), jnp.float32)
    cell = jnp.zeros((B_, D_), jnp.float32)
    q_star = jnp.zeros((B_, 2 * D_), jnp.float32)
    for _ in range(S2V_STEPS):
        lstm_in = jnp.concatenate([q_star, h], axis=-1)    # (B, 3D)
        gates = jnp.dot(lstm_in, w_lstm,
                        preferred_element_type=jnp.float32) + b_l       # (B, 4D)
        i_g = jax.nn.sigmoid(gates[:, 0:D_])
        f_g = jax.nn.sigmoid(gates[:, D_:2 * D_])
        g_g = jnp.tanh(gates[:, 2 * D_:3 * D_])
        o_g = jax.nn.sigmoid(gates[:, 3 * D_:])
        cell = f_g * cell + i_g * g_g
        h = o_g * jnp.tanh(cell)                           # (B, D)

        e_l = jnp.sum(x * h[:, None, :], axis=-1, keepdims=True)        # (B, N, 1)
        e_l = jnp.where(mcol > 0.0, e_l, neg)
        e_l = e_l - jnp.max(e_l, axis=1, keepdims=True)
        a_w = jnp.where(mcol > 0.0, jnp.exp(e_l), 0.0)
        a_w = a_w * pl.reciprocal(jnp.sum(a_w, axis=1, keepdims=True) + 1e-9,
                                  approx=True)
        r_vec = jnp.sum(a_w * x, axis=1)                   # (B, D)
        q_star = jnp.concatenate([h, r_vec], axis=-1)      # (B, 2D)

    # ---- output head, lane-dense (128-wide) store
    w_out = w_ref[R_OUT:R_OUT + 2 * D_, :]                 # (64, 128), zero-padded
    b_out = w_ref[R_BOUT:R_BOUT + 1, :]                    # (1, 128), zero-padded
    out = jnp.dot(q_star, w_out, preferred_element_type=jnp.float32) + b_out
    out_ref[...] = out.astype(out_ref.dtype)


# =====================  wrapper-side packing (free layout plumbing)  =========
def _pack_weights(params):
    F, E, M, A, N, D = NODE_F, EDGE_F, MSG_F, ADJ_D, N_ATOMS, READ_D
    w = jnp.zeros((W_ROWS, 128), jnp.float32)

    # 1. W_msg: block 0 = b_edge (the "d" term), blocks 1..E = w_edge blocks.
    w_edge_blocks = params["w_edge"].reshape(F, E, M).transpose(1, 0, 2).reshape(E * F, M)
    w_msg = jnp.concatenate([params["b_edge"], w_edge_blocks], axis=0)   # (NB*F, M)
    w = w.at[R_MSG:R_MSG + NB * F, 0:M].set(w_msg)

    # 2. W_attadj: block-diag [w_att_kron | w_adj_kron], b_att folded into the
    #    first row of the ones-block.
    eye_n = jnp.eye(N, dtype=jnp.float32)
    wa = jnp.zeros((A_MROW - A_ONE, 2 * N), jnp.float32)                 # (104, 16)
    wa = wa.at[0, 0:N].set(params["b_att"][0, 0])
    wa = wa.at[N:N + E * N, 0:N].set(jnp.kron(params["w_att"].reshape(E, 1), eye_n))
    wa = wa.at[N + E * N:N + E * N + A * N, N:2 * N].set(
        jnp.kron(params["w_adj"].reshape(A, 1), eye_n))
    w = w.at[R_ATT:R_ATT + (A_MROW - A_ONE), 0:2 * N].set(wa)

    # 3. expansion matrix: kron(ones(1, NB), I_N)
    expand = jnp.kron(jnp.ones((1, NB), jnp.float32), eye_n)             # (N, NB*N)
    w = w.at[R_EXP:R_EXP + N, 0:NB * N].set(expand)

    # 4. GRU block-diag weight
    wg = jnp.zeros((M + F, 6 * F), jnp.float32)
    wg = wg.at[0:M, 0:3 * F].set(params["w_i"])
    wg = wg.at[M:M + F, 3 * F:6 * F].set(params["w_h"])
    w = w.at[R_GRU:R_GRU + M + F, 0:6 * F].set(wg)

    # 5. Set2Vec LSTM stacked weight
    w_lstm = jnp.concatenate([params["w_li"], params["w_lh"]], axis=0)   # (3D, 4D)
    w = w.at[R_LSTM:R_LSTM + 3 * D, 0:4 * D].set(w_lstm)

    # 6. output head (zero-padded to 128 lanes)
    w = w.at[R_OUT:R_OUT + 2 * D, 0:OUT_D].set(params["w_out"])

    # 7. biases
    w = w.at[R_BGRU, 0:3 * F].set(params["b_i"][0])
    w = w.at[R_BGRU, 3 * F:6 * F].set(params["b_h"][0])
    w = w.at[R_BL, 0:4 * D].set(params["b_l"][0])
    w = w.at[R_BOUT, 0:OUT_D].set(params["b_out"][0])
    return w


def _pack_activations(afm, bfm, adj, mask):
    b, n, f = afm.shape
    e = bfm.shape[-1]
    a = adj.shape[-1]
    bfm_ej = jnp.transpose(bfm, (0, 1, 3, 2)).reshape(b, n, e * n)   # lane = e*N + j
    adj_aj = jnp.transpose(adj, (0, 1, 3, 2)).reshape(b, n, a * n)   # lane = a*N + j
    ones_blk = jnp.ones((b, n, n), jnp.float32)
    mask_col = mask.reshape(b, n, 1).astype(jnp.float32)
    mask_row = jnp.broadcast_to(mask.reshape(b, 1, n), (b, n, n)).astype(jnp.float32)
    pad = jnp.zeros((b, n, ACT_LANES - (A_MCOL + 1)), jnp.float32)
    return jnp.concatenate(
        [afm, ones_blk, bfm_ej, adj_aj, mask_row, mask_col, pad], axis=-1)


def _pack_afm_blockdiag(afm):
    b, n, f = afm.shape
    eye_blk = jnp.eye(NB, dtype=jnp.float32)
    bd = jnp.einsum('kl,bjf->bkjlf', eye_blk, afm)        # (B, NB, N, NB, F)
    return bd.reshape(b * NB * n, NB * f)                 # (B*72, 144)


def init_params(key):
    ks = jax.random.split(key, 16)
    s = 0.1
    return {
        "w_edge": s * jax.random.normal(ks[0], (NODE_F, EDGE_F * MSG_F), jnp.float32),
        "b_edge": s * jax.random.normal(ks[1], (NODE_F, MSG_F), jnp.float32),
        "w_att":  s * jax.random.normal(ks[2], (1, EDGE_F), jnp.float32),
        "b_att":  s * jax.random.normal(ks[3], (1, 1), jnp.float32),
        "w_adj":  s * jax.random.normal(ks[4], (1, ADJ_D), jnp.float32),
        "w_i":    s * jax.random.normal(ks[5], (MSG_F, 3 * NODE_F), jnp.float32),
        "w_h":    s * jax.random.normal(ks[6], (NODE_F, 3 * NODE_F), jnp.float32),
        "b_i":    s * jax.random.normal(ks[7], (1, 3 * NODE_F), jnp.float32),
        "b_h":    s * jax.random.normal(ks[8], (1, 3 * NODE_F), jnp.float32),
        "w_li":   s * jax.random.normal(ks[9], (2 * READ_D, 4 * READ_D), jnp.float32),
        "w_lh":   s * jax.random.normal(ks[10], (READ_D, 4 * READ_D), jnp.float32),
        "b_l":    s * jax.random.normal(ks[11], (1, 4 * READ_D), jnp.float32),
        "w_out":  s * jax.random.normal(ks[12], (2 * READ_D, OUT_D), jnp.float32),
        "b_out":  s * jax.random.normal(ks[13], (1, OUT_D), jnp.float32),
    }


@jax.jit
def mol_graph_forward(params, afm, bfm, adj, mask):
    batch = afm.shape[0]
    act = _pack_activations(afm, bfm, adj, mask)      # (B, N, 136)
    bd = _pack_afm_blockdiag(afm)                     # (144, 144)
    w = _pack_weights(params)                         # (456, 128)

    # The reference loop runs `message_steps` times but feeds the original afm
    # every iteration, so every iteration yields the same node_state; the
    # kernel evaluates the message pass once (MSG_STEPS kept for documentation).
    out_pad = pl.pallas_call(
        fused_mol_graph_kernel,
        out_shape=jax.ShapeDtypeStruct((batch, 128), jnp.float32),
        grid=(1,),
        in_specs=[
            pl.BlockSpec(act.shape, lambda i: (0, 0, 0)),   # packed activations
            pl.BlockSpec(bd.shape, lambda i: (0, 0)),       # block-diag afm
            pl.BlockSpec(w.shape, lambda i: (0, 0)),        # packed weights/biases
        ],
        out_specs=pl.BlockSpec((batch, 128), lambda i: (0, 0)),
        compiler_params=pltpu.CompilerParams(
            dimension_semantics=("arbitrary",)),
    )(act, bd, w)
    return out_pad[:, :OUT_D]


if __name__ == "__main__":
    key = jax.random.PRNGKey(0)
    k_afm, k_bfm, k_adj, k_par = jax.random.split(key, 4)

    afm = jax.random.normal(k_afm, (B, N_ATOMS, NODE_F), jnp.float32)
    bfm = jax.random.normal(k_bfm, (B, N_ATOMS, N_ATOMS, EDGE_F), jnp.float32)
    adj = jnp.abs(jax.random.normal(k_adj, (B, N_ATOMS, N_ATOMS, ADJ_D), jnp.float32))
    valid_counts = jnp.array([6, 8], dtype=jnp.int32)            # atoms per mol
    mask = (jnp.arange(N_ATOMS)[None, :] < valid_counts[:, None]
            ).astype(jnp.float32)[..., None]                      # (B, N, 1)

    params = init_params(k_par)

    out = mol_graph_forward(params, afm, bfm, adj, mask)
    out = jax.block_until_ready(out)
    assert out.shape == (B, OUT_D)
    assert bool(jnp.all(jnp.isfinite(out)))
    print("KERNEL_OK")
</pallas_src>

<mosaic_0001>
module attributes {stable_mosaic.version = 11 : i64} {
  func.func @fused_mol_graph_kernel(%arg0: i32, %arg1: memref<2x8x136xf32, #tpu.memory_space<vmem>>, %arg2: memref<144x144xf32, #tpu.memory_space<vmem>>, %arg3: memref<456x128xf32, #tpu.memory_space<vmem>>, %arg4: memref<2x128xf32, #tpu.memory_space<vmem>>) attributes {dimension_semantics = [#tpu.dimension_semantics<arbitrary>], iteration_bounds = array<i64: 1>, scalar_prefetch = 0 : i64, scratch_operands = 0 : i64, tpu.core_type = #tpu.core_type<tc>, window_params = [{pipeline_mode = #tpu.pipeline_mode<synchronous>, transform_indices = @transform_0, window_bounds = array<i64: 2, 8, 136>}, {pipeline_mode = #tpu.pipeline_mode<synchronous>, transform_indices = @transform_1, window_bounds = array<i64: 144, 144>}, {pipeline_mode = #tpu.pipeline_mode<synchronous>, transform_indices = @transform_2, window_bounds = array<i64: 456, 128>}, {pipeline_mode = #tpu.pipeline_mode<synchronous>, transform_indices = @transform_3, window_bounds = array<i64: 2, 128>}]} {
    %c0 = arith.constant 0 : index
    %c0_0 = arith.constant 0 : index
    %c0_1 = arith.constant 0 : index
    %0 = vector.load %arg1[%c0, %c0_0, %c0_1] : memref<2x8x136xf32, #tpu.memory_space<vmem>>, vector<2x8x136xf32>
    %1 = vector.extract_strided_slice %0 {offsets = [0, 0, 0], sizes = [2, 8, 16], strides = [1, 1, 1]} : vector<2x8x136xf32> to vector<2x8x16xf32>
    %2 = vector.extract_strided_slice %0 {offsets = [0, 0, 120], sizes = [2, 8, 8], strides = [1, 1, 1]} : vector<2x8x136xf32> to vector<2x8x8xf32>
    %3 = vector.extract_strided_slice %0 {offsets = [0, 0, 128], sizes = [2, 8, 1], strides = [1, 1, 1]} : vector<2x8x136xf32> to vector<2x8x1xf32>
    %4 = vector.shape_cast %1 : vector<2x8x16xf32> to vector<16x16xf32>
    %c0_2 = arith.constant 0 : index
    %c0_3 = arith.constant 0 : index
    %5 = vector.load %arg3[%c0_2, %c0_3] : memref<456x128xf32, #tpu.memory_space<vmem>>, vector<144x16xf32>
    %c0_4 = arith.constant 0 : index
    %c0_5 = arith.constant 0 : index
    %6 = vector.load %arg2[%c0_4, %c0_5] : memref<144x144xf32, #tpu.memory_space<vmem>>, vector<144x144xf32>
    %cst = arith.constant dense<0.000000e+00> : vector<144x16xf32>
    %7 = tpu.matmul %6, %5, %cst {dimension_numbers = #tpu.dot_dimension_numbers<[1], [0], [0], [1], [0, 0, 1, 1], [], []>} : vector<144x144xf32>, vector<144x16xf32>, vector<144x16xf32> -> vector<144x16xf32>
    %8 = vector.shape_cast %7 : vector<144x16xf32> to vector<2x72x16xf32>
    %9 = vector.extract_strided_slice %0 {offsets = [0, 0, 16], sizes = [2, 8, 104], strides = [1, 1, 1]} : vector<2x8x136xf32> to vector<2x8x104xf32>
    %10 = vector.shape_cast %9 : vector<2x8x104xf32> to vector<16x104xf32>
    %c144 = arith.constant 144 : index
    %c0_6 = arith.constant 0 : index
    %11 = vector.load %arg3[%c144, %c0_6] : memref<456x128xf32, #tpu.memory_space<vmem>>, vector<104x16xf32>
    %cst_7 = arith.constant dense<0.000000e+00> : vector<16x16xf32>
    %12 = tpu.matmul %10, %11, %cst_7 {dimension_numbers = #tpu.dot_dimension_numbers<[1], [0], [0], [1], [0, 0, 1, 1], [], []>} : vector<16x104xf32>, vector<104x16xf32>, vector<16x16xf32> -> vector<16x16xf32>
    %13 = vector.shape_cast %12 : vector<16x16xf32> to vector<2x8x16xf32>
    %14 = vector.extract_strided_slice %13 {offsets = [0, 0, 0], sizes = [2, 8, 8], strides = [1, 1, 1]} : vector<2x8x16xf32> to vector<2x8x8xf32>
    %15 = arith.negf %14 : vector<2x8x8xf32>
    %16 = math.exp %15 : vector<2x8x8xf32>
    %cst_8 = arith.constant 1.000000e+00 : f32
    %17 = vector.broadcast %cst_8 : f32 to vector<2x8x8xf32>
    %18 = arith.addf %17, %16 : vector<2x8x8xf32>
    %19 = arith.divf %17, %18 : vector<2x8x8xf32>
    %20 = vector.extract_strided_slice %13 {offsets = [0, 0, 8], sizes = [2, 8, 8], strides = [1, 1, 1]} : vector<2x8x16xf32> to vector<2x8x8xf32>
    %cst_9 = arith.constant 0.000000e+00 : f32
    %21 = vector.broadcast %cst_9 : f32 to vector<2x8x8xf32>
    %22 = arith.cmpf ogt, %2, %21 : vector<2x8x8xf32>
    %cst_10 = arith.constant -1.000000e+09 : f32
    %23 = vector.broadcast %cst_10 : f32 to vector<2x8x8xf32>
    %24 = arith.select %22, %20, %23 : vector<2x8x8xi1>, vector<2x8x8xf32>
    %cst_11 = arith.constant dense<0xFF800000> : vector<2x8xf32>
    %25 = vector.multi_reduction <maximumf>, %24, %cst_11 [2] : vector<2x8x8xf32> to vector<2x8xf32>
    %26 = vector.shape_cast %25 : vector<2x8xf32> to vector<2x8x1xf32>
    %27 = vector.broadcast %26 : vector<2x8x1xf32> to vector<2x8x8xf32>
    %28 = arith.subf %24, %27 : vector<2x8x8xf32>
    %cst_12 = arith.constant 0.000000e+00 : f32
    %29 = vector.broadcast %cst_12 : f32 to vector<2x8x8xf32>
    %30 = arith.cmpf ogt, %2, %29 : vector<2x8x8xf32>
    %31 = math.exp %28 : vector<2x8x8xf32>
    %cst_13 = arith.constant 0.000000e+00 : f32
    %32 = vector.broadcast %cst_13 : f32 to vector<2x8x8xf32>
    %33 = arith.select %30, %31, %32 : vector<2x8x8xi1>, vector<2x8x8xf32>
    %cst_14 = arith.constant dense<0.000000e+00> : vector<2x8xf32>
    %34 = vector.multi_reduction <add>, %33, %cst_14 [2] : vector<2x8x8xf32> to vector<2x8xf32>
    %35 = vector.shape_cast %34 : vector<2x8xf32> to vector<2x8x1xf32>
    %cst_15 = arith.constant 9.99999971E-10 : f32
    %36 = vector.broadcast %cst_15 : f32 to vector<2x8x1xf32>
    %37 = arith.addf %35, %36 : vector<2x8x1xf32>
    %38 = tpu.reciprocal %37 {approx = true} : vector<2x8x1xf32> -> vector<2x8x1xf32>
    %39 = vector.broadcast %38 : vector<2x8x1xf32> to vector<2x8x8xf32>
    %40 = arith.mulf %33, %39 : vector<2x8x8xf32>
    %41 = arith.mulf %40, %19 : vector<2x8x8xf32>
    %c248 = arith.constant 248 : index
    %c0_16 = arith.constant 0 : index
    %42 = vector.load %arg3[%c248, %c0_16] : memref<456x128xf32, #tpu.memory_space<vmem>>, vector<8x72xf32>
    %43 = vector.shape_cast %41 : vector<2x8x8xf32> to vector<16x8xf32>
    %cst_17 = arith.constant dense<0.000000e+00> : vector<16x72xf32>
    %44 = tpu.matmul %43, %42, %cst_17 {dimension_numbers = #tpu.dot_dimension_numbers<[1], [0], [0], [1], [0, 0, 1, 1], [], []>} : vector<16x8xf32>, vector<8x72xf32>, vector<16x72xf32> -> vector<16x72xf32>
    %45 = vector.shape_cast %44 : vector<16x72xf32> to vector<2x8x72xf32>
    %46 = vector.extract_strided_slice %0 {offsets = [0, 0, 16], sizes = [2, 8, 72], strides = [1, 1, 1]} : vector<2x8x136xf32> to vector<2x8x72xf32>
    %47 = arith.mulf %46, %45 : vector<2x8x72xf32>
    "tpu.trace_start"() <{level = 10 : i32, message = "bil,blm->bim"}> : () -> ()
    %cst_18 = arith.constant dense<0.000000e+00> : vector<2x8x16xf32>
    %48 = tpu.matmul %47, %8, %cst_18 {dimension_numbers = #tpu.dot_dimension_numbers<[2], [1], [1], [2], [0, 0, 0, 1, 1, 2], [0], [0]>} : vector<2x8x72xf32>, vector<2x72x16xf32>, vector<2x8x16xf32> -> vector<2x8x16xf32>
    "tpu.trace_stop"() : () -> ()
    %49 = vector.shape_cast %48 : vector<2x8x16xf32> to vector<16x16xf32>
    %50 = tpu.concatenate %49, %4 in 1 : vector<16x16xf32>, vector<16x16xf32> -> vector<16x32xf32>
    %c256 = arith.constant 256 : index
    %c0_19 = arith.constant 0 : index
    %51 = vector.load %arg3[%c256, %c0_19] : memref<456x128xf32, #tpu.memory_space<vmem>>, vector<32x96xf32>
    %cst_20 = arith.constant dense<0.000000e+00> : vector<16x96xf32>
    %52 = tpu.matmul %50, %51, %cst_20 {dimension_numbers = #tpu.dot_dimension_numbers<[1], [0], [0], [1], [0, 0, 1, 1], [], []>} : vector<16x32xf32>, vector<32x96xf32>, vector<16x96xf32> -> vector<16x96xf32>
    %c448 = arith.constant 448 : index
    %c0_21 = arith.constant 0 : index
    %53 = vector.load %arg3[%c448, %c0_21] : memref<456x128xf32, #tpu.memory_space<vmem>>, vector<1x48xf32>
    %c448_22 = arith.constant 448 : index
    %c48 = arith.constant 48 : index
    %54 = vector.load %arg3[%c448_22, %c48] : memref<456x128xf32, #tpu.memory_space<vmem>>, vector<1x48xf32>
    %55 = vector.extract_strided_slice %52 {offsets = [0, 0], sizes = [16, 48], strides = [1, 1]} : vector<16x96xf32> to vector<16x48xf32>
    %56 = vector.broadcast %53 : vector<1x48xf32> to vector<16x48xf32>
    %57 = arith.addf %55, %56 : vector<16x48xf32>
    %58 = vector.extract_strided_slice %52 {offsets = [0, 48], sizes = [16, 48], strides = [1, 1]} : vector<16x96xf32> to vector<16x48xf32>
    %59 = vector.broadcast %54 : vector<1x48xf32> to vector<16x48xf32>
    %60 = arith.addf %58, %59 : vector<16x48xf32>
    %61 = vector.extract_strided_slice %57 {offsets = [0, 0], sizes = [16, 16], strides = [1, 1]} : vector<16x48xf32> to vector<16x16xf32>
    %62 = vector.extract_strided_slice %60 {offsets = [0, 0], sizes = [16, 16], strides = [1, 1]} : vector<16x48xf32> to vector<16x16xf32>
    %63 = arith.addf %61, %62 : vector<16x16xf32>
    %64 = arith.negf %63 : vector<16x16xf32>
    %65 = math.exp %64 : vector<16x16xf32>
    %cst_23 = arith.constant 1.000000e+00 : f32
    %66 = vector.broadcast %cst_23 : f32 to vector<16x16xf32>
    %67 = arith.addf %66, %65 : vector<16x16xf32>
    %68 = arith.divf %66, %67 : vector<16x16xf32>
    %69 = vector.extract_strided_slice %57 {offsets = [0, 16], sizes = [16, 16], strides = [1, 1]} : vector<16x48xf32> to vector<16x16xf32>
    %70 = vector.extract_strided_slice %60 {offsets = [0, 16], sizes = [16, 16], strides = [1, 1]} : vector<16x48xf32> to vector<16x16xf32>
    %71 = arith.addf %69, %70 : vector<16x16xf32>
    %72 = arith.negf %71 : vector<16x16xf32>
    %73 = math.exp %72 : vector<16x16xf32>
    %cst_24 = arith.constant 1.000000e+00 : f32
    %74 = vector.broadcast %cst_24 : f32 to vector<16x16xf32>
    %75 = arith.addf %74, %73 : vector<16x16xf32>
    %76 = arith.divf %74, %75 : vector<16x16xf32>
    %77 = vector.extract_strided_slice %57 {offsets = [0, 32], sizes = [16, 16], strides = [1, 1]} : vector<16x48xf32> to vector<16x16xf32>
    %78 = vector.extract_strided_slice %60 {offsets = [0, 32], sizes = [16, 16], strides = [1, 1]} : vector<16x48xf32> to vector<16x16xf32>
    %79 = arith.mulf %68, %78 : vector<16x16xf32>
    %80 = arith.addf %77, %79 : vector<16x16xf32>
    %81 = math.tanh %80 : vector<16x16xf32>
    %cst_25 = arith.constant 1.000000e+00 : f32
    %82 = vector.broadcast %cst_25 : f32 to vector<16x16xf32>
    %83 = arith.subf %82, %76 : vector<16x16xf32>
    %84 = arith.mulf %83, %81 : vector<16x16xf32>
    %85 = arith.mulf %76, %4 : vector<16x16xf32>
    %86 = arith.addf %84, %85 : vector<16x16xf32>
    %87 = vector.shape_cast %86 : vector<16x16xf32> to vector<2x8x16xf32>
    %88 = vector.broadcast %3 : vector<2x8x1xf32> to vector<2x8x16xf32>
    %89 = arith.mulf %87, %88 : vector<2x8x16xf32>
    %90 = tpu.concatenate %89, %1 in 2 : vector<2x8x16xf32>, vector<2x8x16xf32> -> vector<2x8x32xf32>
    %c288 = arith.constant 288 : index
    %c0_26 = arith.constant 0 : index
    %91 = vector.load %arg3[%c288, %c0_26] : memref<456x128xf32, #tpu.memory_space<vmem>>, vector<96x128xf32>
    %c449 = arith.constant 449 : index
    %c0_27 = arith.constant 0 : index
    %92 = vector.load %arg3[%c449, %c0_27] : memref<456x128xf32, #tpu.memory_space<vmem>>, vector<1x128xf32>
    %cst_28 = arith.constant 0.000000e+00 : f32
    %93 = vector.broadcast %cst_28 : f32 to vector<2x32xf32>
    %cst_29 = arith.constant 0.000000e+00 : f32
    %94 = vector.broadcast %cst_29 : f32 to vector<2x32xf32>
    %cst_30 = arith.constant 0.000000e+00 : f32
    %95 = vector.broadcast %cst_30 : f32 to vector<2x64xf32>
    %96 = tpu.concatenate %95, %93 in 1 : vector<2x64xf32>, vector<2x32xf32> -> vector<2x96xf32>
    %cst_31 = arith.constant dense<0.000000e+00> : vector<2x128xf32>
    %97 = tpu.matmul %96, %91, %cst_31 {dimension_numbers = #tpu.dot_dimension_numbers<[1], [0], [0], [1], [0, 0, 1, 1], [], []>} : vector<2x96xf32>, vector<96x128xf32>, vector<2x128xf32> -> vector<2x128xf32>
    %98 = vector.broadcast %92 : vector<1x128xf32> to vector<2x128xf32>
    %99 = arith.addf %97, %98 : vector<2x128xf32>
    %100 = vector.extract_strided_slice %99 {offsets = [0, 0], sizes = [2, 32], strides = [1, 1]} : vector<2x128xf32> to vector<2x32xf32>
    %101 = arith.negf %100 : vector<2x32xf32>
    %102 = math.exp %101 : vector<2x32xf32>
    %cst_32 = arith.constant 1.000000e+00 : f32
    %103 = vector.broadcast %cst_32 : f32 to vector<2x32xf32>
    %104 = arith.addf %103, %102 : vector<2x32xf32>
    %105 = arith.divf %103, %104 : vector<2x32xf32>
    %106 = vector.extract_strided_slice %99 {offsets = [0, 32], sizes = [2, 32], strides = [1, 1]} : vector<2x128xf32> to vector<2x32xf32>
    %107 = arith.negf %106 : vector<2x32xf32>
    %108 = math.exp %107 : vector<2x32xf32>
    %cst_33 = arith.constant 1.000000e+00 : f32
    %109 = vector.broadcast %cst_33 : f32 to vector<2x32xf32>
    %110 = arith.addf %109, %108 : vector<2x32xf32>
    %111 = arith.divf %109, %110 : vector<2x32xf32>
    %112 = vector.extract_strided_slice %99 {offsets = [0, 64], sizes = [2, 32], strides = [1, 1]} : vector<2x128xf32> to vector<2x32xf32>
    %113 = math.tanh %112 : vector<2x32xf32>
    %114 = vector.extract_strided_slice %99 {offsets = [0, 96], sizes = [2, 32], strides = [1, 1]} : vector<2x128xf32> to vector<2x32xf32>
    %115 = arith.negf %114 : vector<2x32xf32>
    %116 = math.exp %115 : vector<2x32xf32>
    %cst_34 = arith.constant 1.000000e+00 : f32
    %117 = vector.broadcast %cst_34 : f32 to vector<2x32xf32>
    %118 = arith.addf %117, %116 : vector<2x32xf32>
    %119 = arith.divf %117, %118 : vector<2x32xf32>
    %120 = arith.mulf %111, %94 : vector<2x32xf32>
    %121 = arith.mulf %105, %113 : vector<2x32xf32>
    %122 = arith.addf %120, %121 : vector<2x32xf32>
    %123 = math.tanh %122 : vector<2x32xf32>
    %124 = arith.mulf %119, %123 : vector<2x32xf32>
    %125 = vector.shape_cast %124 : vector<2x32xf32> to vector<2x1x32xf32>
    %126 = vector.broadcast %125 : vector<2x1x32xf32> to vector<2x8x32xf32>
    %127 = arith.mulf %90, %126 : vector<2x8x32xf32>
    %cst_35 = arith.constant dense<0.000000e+00> : vector<2x8xf32>
    %128 = vector.multi_reduction <add>, %127, %cst_35 [2] : vector<2x8x32xf32> to vector<2x8xf32>
    %129 = vector.shape_cast %128 : vector<2x8xf32> to vector<2x8x1xf32>
    %cst_36 = arith.constant 0.000000e+00 : f32
    %130 = vector.broadcast %cst_36 : f32 to vector<2x8x1xf32>
    %131 = arith.cmpf ogt, %3, %130 : vector<2x8x1xf32>
    %cst_37 = arith.constant -1.000000e+09 : f32
    %132 = vector.broadcast %cst_37 : f32 to vector<2x8x1xf32>
    %133 = arith.select %131, %129, %132 : vector<2x8x1xi1>, vector<2x8x1xf32>
    %cst_38 = arith.constant dense<0xFF800000> : vector<2x1xf32>
    %134 = vector.multi_reduction <maximumf>, %133, %cst_38 [1] : vector<2x8x1xf32> to vector<2x1xf32>
    %135 = vector.shape_cast %134 : vector<2x1xf32> to vector<2x1x1xf32>
    %136 = vector.broadcast %135 : vector<2x1x1xf32> to vector<2x8x1xf32>
    %137 = arith.subf %133, %136 : vector<2x8x1xf32>
    %cst_39 = arith.constant 0.000000e+00 : f32
    %138 = vector.broadcast %cst_39 : f32 to vector<2x8x1xf32>
    %139 = arith.cmpf ogt, %3, %138 : vector<2x8x1xf32>
    %140 = math.exp %137 : vector<2x8x1xf32>
    %cst_40 = arith.constant 0.000000e+00 : f32
    %141 = vector.broadcast %cst_40 : f32 to vector<2x8x1xf32>
    %142 = arith.select %139, %140, %141 : vector<2x8x1xi1>, vector<2x8x1xf32>
    %cst_41 = arith.constant dense<0.000000e+00> : vector<2x1xf32>
    %143 = vector.multi_reduction <add>, %142, %cst_41 [1] : vector<2x8x1xf32> to vector<2x1xf32>
    %144 = vector.shape_cast %143 : vector<2x1xf32> to vector<2x1x1xf32>
    %cst_42 = arith.constant 9.99999971E-10 : f32
    %145 = vector.broadcast %cst_42 : f32 to vector<2x1x1xf32>
    %146 = arith.addf %144, %145 : vector<2x1x1xf32>
    %147 = tpu.reciprocal %146 {approx = true} : vector<2x1x1xf32> -> vector<2x1x1xf32>
    %148 = vector.broadcast %147 : vector<2x1x1xf32> to vector<2x8x1xf32>
    %149 = arith.mulf %142, %148 : vector<2x8x1xf32>
    %150 = vector.broadcast %149 : vector<2x8x1xf32> to vector<2x8x32xf32>
    %151 = arith.mulf %150, %90 : vector<2x8x32xf32>
    %cst_43 = arith.constant dense<0.000000e+00> : vector<2x32xf32>
    %152 = vector.multi_reduction <add>, %151, %cst_43 [1] : vector<2x8x32xf32> to vector<2x32xf32>
    %153 = tpu.concatenate %124, %152 in 1 : vector<2x32xf32>, vector<2x32xf32> -> vector<2x64xf32>
    %154 = tpu.concatenate %153, %124 in 1 : vector<2x64xf32>, vector<2x32xf32> -> vector<2x96xf32>
    %cst_44 = arith.constant dense<0.000000e+00> : vector<2x128xf32>
    %155 = tpu.matmul %154, %91, %cst_44 {dimension_numbers = #tpu.dot_dimension_numbers<[1], [0], [0], [1], [0, 0, 1, 1], [], []>} : vector<2x96xf32>, vector<96x128xf32>, vector<2x128xf32> -> vector<2x128xf32>
    %156 = vector.broadcast %92 : vector<1x128xf32> to vector<2x128xf32>
    %157 = arith.addf %155, %156 : vector<2x128xf32>
    %158 = vector.extract_strided_slice %157 {offsets = [0, 0], sizes = [2, 32], strides = [1, 1]} : vector<2x128xf32> to vector<2x32xf32>
    %159 = arith.negf %158 : vector<2x32xf32>
    %160 = math.exp %159 : vector<2x32xf32>
    %cst_45 = arith.constant 1.000000e+00 : f32
    %161 = vector.broadcast %cst_45 : f32 to vector<2x32xf32>
    %162 = arith.addf %161, %160 : vector<2x32xf32>
    %163 = arith.divf %161, %162 : vector<2x32xf32>
    %164 = vector.extract_strided_slice %157 {offsets = [0, 32], sizes = [2, 32], strides = [1, 1]} : vector<2x128xf32> to vector<2x32xf32>
    %165 = arith.negf %164 : vector<2x32xf32>
    %166 = math.exp %165 : vector<2x32xf32>
    %cst_46 = arith.constant 1.000000e+00 : f32
    %167 = vector.broadcast %cst_46 : f32 to vector<2x32xf32>
    %168 = arith.addf %167, %166 : vector<2x32xf32>
    %169 = arith.divf %167, %168 : vector<2x32xf32>
    %170 = vector.extract_strided_slice %157 {offsets = [0, 64], sizes = [2, 32], strides = [1, 1]} : vector<2x128xf32> to vector<2x32xf32>
    %171 = math.tanh %170 : vector<2x32xf32>
    %172 = vector.extract_strided_slice %157 {offsets = [0, 96], sizes = [2, 32], strides = [1, 1]} : vector<2x128xf32> to vector<2x32xf32>
    %173 = arith.negf %172 : vector<2x32xf32>
    %174 = math.exp %173 : vector<2x32xf32>
    %cst_47 = arith.constant 1.000000e+00 : f32
    %175 = vector.broadcast %cst_47 : f32 to vector<2x32xf32>
    %176 = arith.addf %175, %174 : vector<2x32xf32>
    %177 = arith.divf %175, %176 : vector<2x32xf32>
    %178 = arith.mulf %169, %122 : vector<2x32xf32>
    %179 = arith.mulf %163, %171 : vector<2x32xf32>
    %180 = arith.addf %178, %179 : vector<2x32xf32>
    %181 = math.tanh %180 : vector<2x32xf32>
    %182 = arith.mulf %177, %181 : vector<2x32xf32>
    %183 = vector.shape_cast %182 : vector<2x32xf32> to vector<2x1x32xf32>
    %184 = vector.broadcast %183 : vector<2x1x32xf32> to vector<2x8x32xf32>
    %185 = arith.mulf %90, %184 : vector<2x8x32xf32>
    %cst_48 = arith.constant dense<0.000000e+00> : vector<2x8xf32>
    %186 = vector.multi_reduction <add>, %185, %cst_48 [2] : vector<2x8x32xf32> to vector<2x8xf32>
    %187 = vector.shape_cast %186 : vector<2x8xf32> to vector<2x8x1xf32>
    %cst_49 = arith.constant 0.000000e+00 : f32
    %188 = vector.broadcast %cst_49 : f32 to vector<2x8x1xf32>
    %189 = arith.cmpf ogt, %3, %188 : vector<2x8x1xf32>
    %cst_50 = arith.constant -1.000000e+09 : f32
    %190 = vector.broadcast %cst_50 : f32 to vector<2x8x1xf32>
    %191 = arith.select %189, %187, %190 : vector<2x8x1xi1>, vector<2x8x1xf32>
    %cst_51 = arith.constant dense<0xFF800000> : vector<2x1xf32>
    %192 = vector.multi_reduction <maximumf>, %191, %cst_51 [1] : vector<2x8x1xf32> to vector<2x1xf32>
    %193 = vector.shape_cast %192 : vector<2x1xf32> to vector<2x1x1xf32>
    %194 = vector.broadcast %193 : vector<2x1x1xf32> to vector<2x8x1xf32>
    %195 = arith.subf %191, %194 : vector<2x8x1xf32>
    %cst_52 = arith.constant 0.000000e+00 : f32
    %196 = vector.broadcast %cst_52 : f32 to vector<2x8x1xf32>
    %197 = arith.cmpf ogt, %3, %196 : vector<2x8x1xf32>
    %198 = math.exp %195 : vector<2x8x1xf32>
    %cst_53 = arith.constant 0.000000e+00 : f32
    %199 = vector.broadcast %cst_53 : f32 to vector<2x8x1xf32>
    %200 = arith.select %197, %198, %199 : vector<2x8x1xi1>, vector<2x8x1xf32>
    %cst_54 = arith.constant dense<0.000000e+00> : vector<2x1xf32>
    %201 = vector.multi_reduction <add>, %200, %cst_54 [1] : vector<2x8x1xf32> to vector<2x1xf32>
    %202 = vector.shape_cast %201 : vector<2x1xf32> to vector<2x1x1xf32>
    %cst_55 = arith.constant 9.99999971E-10 : f32
    %203 = vector.broadcast %cst_55 : f32 to vector<2x1x1xf32>
    %204 = arith.addf %202, %203 : vector<2x1x1xf32>
    %205 = tpu.reciprocal %204 {approx = true} : vector<2x1x1xf32> -> vector<2x1x1xf32>
    %206 = vector.broadcast %205 : vector<2x1x1xf32> to vector<2x8x1xf32>
    %207 = arith.mulf %200, %206 : vector<2x8x1xf32>
    %208 = vector.broadcast %207 : vector<2x8x1xf32> to vector<2x8x32xf32>
    %209 = arith.mulf %208, %90 : vector<2x8x32xf32>
    %cst_56 = arith.constant dense<0.000000e+00> : vector<2x32xf32>
    %210 = vector.multi_reduction <add>, %209, %cst_56 [1] : vector<2x8x32xf32> to vector<2x32xf32>
    %211 = tpu.concatenate %182, %210 in 1 : vector<2x32xf32>, vector<2x32xf32> -> vector<2x64xf32>
    %212 = tpu.concatenate %211, %182 in 1 : vector<2x64xf32>, vector<2x32xf32> -> vector<2x96xf32>
    %cst_57 = arith.constant dense<0.000000e+00> : vector<2x128xf32>
    %213 = tpu.matmul %212, %91, %cst_57 {dimension_numbers = #tpu.dot_dimension_numbers<[1], [0], [0], [1], [0, 0, 1, 1], [], []>} : vector<2x96xf32>, vector<96x128xf32>, vector<2x128xf32> -> vector<2x128xf32>
    %214 = vector.broadcast %92 : vector<1x128xf32> to vector<2x128xf32>
    %215 = arith.addf %213, %214 : vector<2x128xf32>
    %216 = vector.extract_strided_slice %215 {offsets = [0, 0], sizes = [2, 32], strides = [1, 1]} : vector<2x128xf32> to vector<2x32xf32>
    %217 = arith.negf %216 : vector<2x32xf32>
    %218 = math.exp %217 : vector<2x32xf32>
    %cst_58 = arith.constant 1.000000e+00 : f32
    %219 = vector.broadcast %cst_58 : f32 to vector<2x32xf32>
    %220 = arith.addf %219, %218 : vector<2x32xf32>
    %221 = arith.divf %219, %220 : vector<2x32xf32>
    %222 = vector.extract_strided_slice %215 {offsets = [0, 32], sizes = [2, 32], strides = [1, 1]} : vector<2x128xf32> to vector<2x32xf32>
    %223 = arith.negf %222 : vector<2x32xf32>
    %224 = math.exp %223 : vector<2x32xf32>
    %cst_59 = arith.constant 1.000000e+00 : f32
    %225 = vector.broadcast %cst_59 : f32 to vector<2x32xf32>
    %226 = arith.addf %225, %224 : vector<2x32xf32>
    %227 = arith.divf %225, %226 : vector<2x32xf32>
    %228 = vector.extract_strided_slice %215 {offsets = [0, 64], sizes = [2, 32], strides = [1, 1]} : vector<2x128xf32> to vector<2x32xf32>
    %229 = math.tanh %228 : vector<2x32xf32>
    %230 = vector.extract_strided_slice %215 {offsets = [0, 96], sizes = [2, 32], strides = [1, 1]} : vector<2x128xf32> to vector<2x32xf32>
    %231 = arith.negf %230 : vector<2x32xf32>
    %232 = math.exp %231 : vector<2x32xf32>
    %cst_60 = arith.constant 1.000000e+00 : f32
    %233 = vector.broadcast %cst_60 : f32 to vector<2x32xf32>
    %234 = arith.addf %233, %232 : vector<2x32xf32>
    %235 = arith.divf %233, %234 : vector<2x32xf32>
    %236 = arith.mulf %227, %180 : vector<2x32xf32>
    %237 = arith.mulf %221, %229 : vector<2x32xf32>
    %238 = arith.addf %236, %237 : vector<2x32xf32>
    %239 = math.tanh %238 : vector<2x32xf32>
    %240 = arith.mulf %235, %239 : vector<2x32xf32>
    %241 = vector.shape_cast %240 : vector<2x32xf32> to vector<2x1x32xf32>
    %242 = vector.broadcast %241 : vector<2x1x32xf32> to vector<2x8x32xf32>
    %243 = arith.mulf %90, %242 : vector<2x8x32xf32>
    %cst_61 = arith.constant dense<0.000000e+00> : vector<2x8xf32>
    %244 = vector.multi_reduction <add>, %243, %cst_61 [2] : vector<2x8x32xf32> to vector<2x8xf32>
    %245 = vector.shape_cast %244 : vector<2x8xf32> to vector<2x8x1xf32>
    %cst_62 = arith.constant 0.000000e+00 : f32
    %246 = vector.broadcast %cst_62 : f32 to vector<2x8x1xf32>
    %247 = arith.cmpf ogt, %3, %246 : vector<2x8x1xf32>
    %cst_63 = arith.constant -1.000000e+09 : f32
    %248 = vector.broadcast %cst_63 : f32 to vector<2x8x1xf32>
    %249 = arith.select %247, %245, %248 : vector<2x8x1xi1>, vector<2x8x1xf32>
    %cst_64 = arith.constant dense<0xFF800000> : vector<2x1xf32>
    %250 = vector.multi_reduction <maximumf>, %249, %cst_64 [1] : vector<2x8x1xf32> to vector<2x1xf32>
    %251 = vector.shape_cast %250 : vector<2x1xf32> to vector<2x1x1xf32>
    %252 = vector.broadcast %251 : vector<2x1x1xf32> to vector<2x8x1xf32>
    %253 = arith.subf %249, %252 : vector<2x8x1xf32>
    %cst_65 = arith.constant 0.000000e+00 : f32
    %254 = vector.broadcast %cst_65 : f32 to vector<2x8x1xf32>
    %255 = arith.cmpf ogt, %3, %254 : vector<2x8x1xf32>
    %256 = math.exp %253 : vector<2x8x1xf32>
    %cst_66 = arith.constant 0.000000e+00 : f32
    %257 = vector.broadcast %cst_66 : f32 to vector<2x8x1xf32>
    %258 = arith.select %255, %256, %257 : vector<2x8x1xi1>, vector<2x8x1xf32>
    %cst_67 = arith.constant dense<0.000000e+00> : vector<2x1xf32>
    %259 = vector.multi_reduction <add>, %258, %cst_67 [1] : vector<2x8x1xf32> to vector<2x1xf32>
    %260 = vector.shape_cast %259 : vector<2x1xf32> to vector<2x1x1xf32>
    %cst_68 = arith.constant 9.99999971E-10 : f32
    %261 = vector.broadcast %cst_68 : f32 to vector<2x1x1xf32>
    %262 = arith.addf %260, %261 : vector<2x1x1xf32>
    %263 = tpu.reciprocal %262 {approx = true} : vector<2x1x1xf32> -> vector<2x1x1xf32>
    %264 = vector.broadcast %263 : vector<2x1x1xf32> to vector<2x8x1xf32>
    %265 = arith.mulf %258, %264 : vector<2x8x1xf32>
    %266 = vector.broadcast %265 : vector<2x8x1xf32> to vector<2x8x32xf32>
    %267 = arith.mulf %266, %90 : vector<2x8x32xf32>
    %cst_69 = arith.constant dense<0.000000e+00> : vector<2x32xf32>
    %268 = vector.multi_reduction <add>, %267, %cst_69 [1] : vector<2x8x32xf32> to vector<2x32xf32>
    %269 = tpu.concatenate %240, %268 in 1 : vector<2x32xf32>, vector<2x32xf32> -> vector<2x64xf32>
    %c384 = arith.constant 384 : index
    %c0_70 = arith.constant 0 : index
    %270 = vector.load %arg3[%c384, %c0_70] : memref<456x128xf32, #tpu.memory_space<vmem>>, vector<64x128xf32>
    %c450 = arith.constant 450 : index
    %c0_71 = arith.constant 0 : index
    %271 = vector.load %arg3[%c450, %c0_71] : memref<456x128xf32, #tpu.memory_space<vmem>>, vector<1x128xf32>
    %cst_72 = arith.constant dense<0.000000e+00> : vector<2x128xf32>
    %272 = tpu.matmul %269, %270, %cst_72 {dimension_numbers = #tpu.dot_dimension_numbers<[1], [0], [0], [1], [0, 0, 1, 1], [], []>} : vector<2x64xf32>, vector<64x128xf32>, vector<2x128xf32> -> vector<2x128xf32>
    %273 = vector.broadcast %271 : vector<1x128xf32> to vector<2x128xf32>
    %274 = arith.addf %272, %273 : vector<2x128xf32>
    %c0_73 = arith.constant 0 : index
    %c0_74 = arith.constant 0 : index
    %275 = vector.load %arg4[%c0_73, %c0_74] : memref<2x128xf32, #tpu.memory_space<vmem>>, vector<2x128xf32>
    tpu.vector_store %arg4[%c0_73, %c0_74], %274 {strides = array<i32>} : memref<2x128xf32, #tpu.memory_space<vmem>>, vector<2x128xf32>,
    return
  }
  func.func @transform_0(%arg0: i32) -> (i32, i32, i32) {
    %c0_i32 = arith.constant 0 : i32
    %c0_i32_0 = arith.constant 0 : i32
    %c0_i32_1 = arith.constant 0 : i32
    %c0_i32_2 = arith.constant 0 : i32
    return %c0_i32, %c0_i32_0, %c0_i32_1 : i32, i32, i32
  }
  func.func @transform_1(%arg0: i32) -> (i32, i32) {
    %c0_i32 = arith.constant 0 : i32
    %c0_i32_0 = arith.constant 0 : i32
    %c0_i32_1 = arith.constant 0 : i32
    return %c0_i32, %c0_i32_0 : i32, i32
  }
  func.func @transform_2(%arg0: i32) -> (i32, i32) {
    %c0_i32 = arith.constant 0 : i32
    %c0_i32_0 = arith.constant 0 : i32
    %c0_i32_1 = arith.constant 0 : i32
    return %c0_i32, %c0_i32_0 : i32, i32
  }
  func.func @transform_3(%arg0: i32) -> (i32, i32) {
    %c0_i32 = arith.constant 0 : i32
    %c0_i32_0 = arith.constant 0 : i32
    %c0_i32_1 = arith.constant 0 : i32
    return %c0_i32, %c0_i32_0 : i32, i32
  }
}

</mosaic_0001>

<bundles_post_ra>
// kernel: mol_graph_forward.1
= control target key start
LH: loop header
LB: loop body
LE: loop exit
PB: predicated region body
PF: predicated region fallthrough
CT: control target
= control target key end

     0   :  { %s2262_s16 = smov 112   ;;  %s2896_s0 = inlined_call_operand.vmem [shape: f32[2,8,136], index: 0, kind: input, shape index: {}]   ;;  %s2897_s1 = inlined_call_operand.vmem [shape: f32[144,144], index: 1, kind: input, shape index: {}]   ;;  %s2898_s2 = inlined_call_operand.vmem [shape: f32[456,128], index: 2, kind: input, shape index: {}]   ;;  %s2899_s3 = inlined_call_operand.hbm [shape: f32[2,128], index: 3, kind: output, shape index: {}]  }
   0x1   :  { %v2300_v0 = vld [vmem:[%s2896_s0] sm:$0xff]  ;;  %v283_v1 = vld [vmem:[%s2898_s2 + $0x90] sm:$0xff]  ;;  %v284_v2 = vld [vmem:[%s2898_s2 + $0x98] sm:$0xff] }
   0x2   :  { %298 = vrot.lane.b32.xlu0 %v2300_v0, %s2262_s16  ;;  %v285_v3 = vld [vmem:[%s2898_s2 + $0xa0] sm:$0xff]  ;;  %v286_v4 = vld [vmem:[%s2898_s2 + $0xa8] sm:$0xff]  ;;  %v2319_v5 = vld [vmem:[%s2896_s0 + $0x10] sm:$0xff]  ;;  %v2023_v6 = vpack.c.bf16 %v284_v2, %v283_v1 }
   0x3   :  { %v2027_v7 = vpack.c.bf16 %v286_v4, %v285_v3  ;;  %v287_v8 = vld [vmem:[%s2898_s2 + $0xb0] sm:$0xff]  ;;  %v288_v9 = vld [vmem:[%s2898_s2 + $0xb8] sm:$0xff] }
   0x4   :  { %2024 = vmatprep.subr.bf16.mxu1 %v2023_v6 }
   0x5   :  { %2026 = vmatpush3.bf16.msra.mxu1 %v2023_v6 }
   0x6   :  { %300 = vrot.lane.b32.xlu0 %v2319_v5, %s2262_s16 }
   0x7   :  { %8 = vsyncpa [#allocation3], 0  ;;  %2028 = vmatprep.subr.bf16.mxu1 %v2027_v7  ;;  %v2031_v10 = vpack.c.bf16 %v288_v9, %v287_v8  ;;  %v289_v11 = vld [vmem:[%s2898_s2 + $0xc0] sm:$0xff]  ;;  %v290_v12 = vld [vmem:[%s2898_s2 + $0xc8] sm:$0xff]  ;;  %vm302_vm0 = vcmask 850944   ;;  %vm394_vm1 = vcmp.gt.f32.partialorder %v2300_v0, 0.0 }
   0x8   :  { %v2035_v13 = vpack.c.bf16 %v290_v12, %v289_v11  ;;  %v291_v14 = vld [vmem:[%s2898_s2 + $0xd0] sm:$0xff]  ;;  %v292_v15 = vld [vmem:[%s2898_s2 + $0xd8] sm:$0xff]  ;;  %v293_v17 = vld [vmem:[%s2898_s2 + $0xe0] sm:$0xff]  ;;  %vm406_vm2 = vcmask 1048512   ;;  %vm395_vm3 = vcmp.gt.f32.partialorder %v2319_v5, 0.0  ;;  %s2263_s17 = smov 8  }
   0x9   :  { %2030 = vmatpush3.bf16.msra.mxu1 %v2027_v7  ;;  %v2039_v16 = vpack.c.bf16 %v292_v15, %v291_v14  ;;  %v294_v18 = vld [vmem:[%s2898_s2 + $0xe8] sm:$0xff]  ;;  %v295_v20 = vld [vmem:[%s2898_s2 + $0xf0] sm:$0xff]  ;;  %vm429_vm4 = vcmask 64512   ;;  %s2264_s18 = smov 120   ;;  %v452_v53 = vld [vmem:[%s2898_s2 + $0xf8] sm:$0xff]  ;;  %v2265_v61 = vmov 0.0|0.0  }
   0xa   :  { %2032 = vmatprep.subr.bf16.mxu1 %v2031_v10  ;;  %v2043_v19 = vpack.c.bf16 %v294_v18, %v293_v17  ;;  %v19_v58 = vld [vmem:[%s2898_s2] sm:$0xff]  ;;  %v20_v59 = vld [vmem:[%s2898_s2 + $0x8] sm:$0xff]  ;;  %v21_v60 = vld [vmem:[%s2898_s2 + $0x10] sm:$0xff]  ;;  %1996 = vmatprep.subr.bf16.mxu0 %v2265_v61  ;;  %vm73_vm5 = vcmask 130048   ;;  %s2266_s25 = smov 16   ;;  %vm2268_vm6 = vmmov 0  }
   0xb   :  { %v1997_v62 = vpack.c.bf16 %v20_v59, %v19_v58  ;;  %v22_v63 = vld [vmem:[%s2898_s2 + $0x18] sm:$0xff]  ;;  %v23_v3 = vld [vmem:[%s2898_s2 + $0x20] sm:$0xff]  ;;  %v24_v4 = vld [vmem:[%s2898_s2 + $0x28] sm:$0xff]  ;;  %vm551_vm7 = vcmask 588800   ;;  %vm711_vm8 = vcmask 261120   ;;  %s2269_s5 = smov 80  }
   0xc   :  { %v2000_v1 = vpack.c.bf16 %v22_v63, %v21_v60  ;;  %v38_v8 = vld [vmem:[%s2897_s1 + $0x8] sm:$0xff]  ;;  %v25_v12 = vld [vmem:[%s2898_s2 + $0x30] sm:$0xff]  ;;  %v27_v18 = vld [vmem:[%s2898_s2 + $0x40] sm:$0xff]  ;;  %s2270_s6 = smov 48   ;;  %s2272_s9 = smov 64   ;;  %vm1044_vm10 = vcmask 7168  }
   0xd   :  { %2034 = vmatpush3.bf16.msra.mxu1 %v2031_v10  ;;  %1998 = vmatpush1.bf16.msra.mxu0 %v1997_v62  ;;  %v2003_v10 = vpack.c.bf16 %v24_v4, %v23_v3  ;;  %v62_v58 = vld [vmem:[%s2897_s1 + $0xc8] sm:$0xff]  ;;  %v61_v59 = vld [vmem:[%s2897_s1 + $0xc0] sm:$0xff]  ;;  %v64_v60 = vld [vmem:[%s2897_s1 + $0xd8] sm:$0xff]  ;;  %s2273_s10 = smov 32   ;;  %vm1118_vm12 = vcmask 1041409   ;;  %vm1127_vm13 = vcmask 523264  }
   0xe   :  { %2036 = vmatprep.subr.bf16.mxu1 %v2035_v13  ;;  %1999 = vmatprep.subr.bf16.mxu0 %v2265_v61  ;;  %v63_v62 = vld [vmem:[%s2897_s1 + $0xd0] sm:$0xff]  ;;  %v66_v63 = vld [vmem:[%s2897_s1 + $0xe8] sm:$0xff]  ;;  %vm897_vm14 = vcmask 785408  }
   0xf   :  { %1678 = vmatprep.mubr.msk.f32.mxu0 %vm73_vm5, %v38_v8  ;;  %v67_v3 = vld [vmem:[%s2897_s1 + $0xf0] sm:$0xff]  ;;  %v70_v4 = vld [vmem:[%s2897_s1 + $0x108] sm:$0xff] }
  0x10   :  { %v71_v8 = vld [vmem:[%s2897_s1 + $0x110] sm:$0xff] }
  0x11   :  { %2038 = vmatpush3.bf16.msra.mxu1 %v2035_v13  ;;  %2001 = vmatpush1.bf16.msra.mxu0 %v2000_v1  ;;  %v26_v13 = vld [vmem:[%s2898_s2 + $0x38] sm:$0xff]  ;;  %v65_v1 = vld [vmem:[%s2897_s1 + $0xe0] sm:$0xff] }
  0x12   :  { %2040 = vmatprep.subr.bf16.mxu1 %v2039_v16  ;;  %2002 = vmatprep.subr.bf16.mxu0 %v2265_v61  ;;  %v2006_v17 = vpack.c.bf16 %v26_v13, %v25_v12 }
  0x15   :  { %2042 = vmatpush3.bf16.msra.mxu1 %v2039_v16  ;;  %2004 = vmatpush1.bf16.msra.mxu0 %v2003_v10 }
  0x16   :  { %2044 = vmatprep.subr.bf16.mxu1 %v2043_v19  ;;  %2005 = vmatprep.subr.bf16.mxu0 %v2265_v61 }
  0x19   :  { %2046 = vmatpush3.bf16.msra.mxu1 %v2043_v19  ;;  %v28_v19 = vld [vmem:[%s2898_s2 + $0x48] sm:$0xff]  ;;  %2007 = vmatpush1.bf16.msra.mxu0 %v2006_v17 }
  0x1a   :  { %1833 = vmatprep.subr.mxu1 %v295_v20  ;;  %2008 = vmatprep.subr.bf16.mxu0 %v2265_v61 }
  0x1d   :  { %1834 = vmatpush3.msra.mxu1 %v295_v20  ;;  %v2009_v20 = vpack.c.bf16 %v28_v19, %v27_v18 }
  0x1e   :  { %1838 = vmatprep.subr.mxu1 %v452_v53 }
  0x1f   :  { %2010 = vmatpush1.bf16.msra.mxu0 %v2009_v20 }
  0x20   :  { %2011 = vmatprep.subr.bf16.mxu0 %v2265_v61 }
  0x74   :  { %v299_v21 = vpop.permute.xlu0 %298 }
  0x75   :  { %1835 = vmatprep.mubr.msk.f32.mxu1 %vm302_vm0, %v299_v21  ;;  %v29_v21 = vld [vmem:[%s2898_s2 + $0x50] sm:$0xff] }
  0x78   :  { %v301_v22 = vpop.permute.xlu0 %300 }
  0x79   :  { %1836 = vmatmul.mubr.msk.f32.vlgmr.msra.gmra.mrb[0].mxu1 %vm302_vm0, %v301_v22  ;;  %v30_v22 = vld [vmem:[%s2898_s2 + $0x58] sm:$0xff] }
  0x7a   :  { %1839 = vmatpush3.msra.mxu1 %v452_v53 }
  0x7b   :  { %2047 = vmatprep.subr.bf16.mxu1 %v2265_v61 }
 0x14c   :  { %v1837_v23 = vpop.f32.mrb[0].mxu1 }
 0x14d   :  { %v373_v24 = vpop.f32.mrb[1].mxu1  ;;  %v1699_v41 = vmul.f32 -1.442695, %v1837_v23 }
 0x14e   :  { %398 = vrot.lane.b32.xlu1 %v373_v24, %s2262_s16  ;;  %v1698_v42 = vmul.f32 -1.442695, %v373_v24  ;;  %v31_v24 = vld [vmem:[%s2898_s2 + $0x60] sm:$0xff] }
 0x152   :  { %400 = vrot.lane.b32.xlu1 %v1837_v23, %s2262_s16  ;;  %v2012_v23 = vpack.c.bf16 %v30_v22, %v29_v21 }
 0x154   :  { %2013 = vmatpush1.bf16.msra.mxu0 %v2012_v23 }
 0x155   :  { %2014 = vmatprep.subr.bf16.mxu0 %v2265_v61 }
 0x1c0   :  { %v399_v25 = vpop.permute.xlu1 %398 }
 0x1c1   :  { %v404_v26 = vsel %vm394_vm1, %v399_v25, -1e+09  ;;  %v32_v25 = vld [vmem:[%s2898_s2 + $0x68] sm:$0xff] }
 0x1c2   :  { %v407_v27 = vsel %vm406_vm2, %v404_v26, -inf }
 0x1c3   :  { %408 = vmax.xlane.f32.xlu0 %v407_v27  ;;  %v33_v27 = vld [vmem:[%s2898_s2 + $0x70] sm:$0xff] }
 0x1c4   :  { %v401_v28 = vpop.permute.xlu1 %400 }
 0x1c5   :  { %v405_v29 = vsel %vm395_vm3, %v401_v28, -1e+09  ;;  %v34_v28 = vld [vmem:[%s2898_s2 + $0x78] sm:$0xff] }
 0x1c6   :  { %v410_v30 = vsel %vm406_vm2, %v405_v29, -inf }
 0x1c7   :  { %411 = vmax.xlane.f32.xlu1 %v410_v30  ;;  %v35_v30 = vld [vmem:[%s2898_s2 + $0x80] sm:$0xff] }
 0x250   :  { %v409_v31 = vpop.xlane.xlu0 %408 }
 0x251   :  { %v413_v32 = vsub.f32 %v404_v26, %v409_v31  ;;  %v2015_v26 = vpack.c.bf16 %v32_v25, %v31_v24  ;;  %v36_v31 = vld [vmem:[%s2898_s2 + $0x88] sm:$0xff] }
 0x253   :  { %v415_v33 = vmul.f32 1.442695, %v413_v32  ;;  %2016 = vmatpush1.bf16.msra.mxu0 %v2015_v26  ;;  %v2021_v32 = vpack.c.bf16 %v36_v31, %v35_v30 }
 0x254   :  { %v412_v34 = vpop.xlane.xlu1 %411  ;;  %2017 = vmatprep.subr.bf16.mxu0 %v2265_v61 }
 0x255   :  { %2162 = vpow2.f32 %v415_v33  ;;  %v414_v35 = vsub.f32 %v405_v29, %v412_v34  ;;  %v2018_v29 = vpack.c.bf16 %v34_v28, %v33_v27  ;;  %v37_v33 = vld [vmem:[%s2897_s1] sm:$0xff]  ;;  %v40_v34 = vld [vmem:[%s2897_s1 + $0x18] sm:$0xff] }
 0x257   :  { %v417_v36 = vmul.f32 1.442695, %v414_v35  ;;  %2019 = vmatpush1.bf16.msra.mxu0 %v2018_v29  ;;  %v39_v35 = vld [vmem:[%s2897_s1 + $0x10] sm:$0xff] }
 0x258   :  { %2020 = vmatprep.subr.bf16.mxu0 %v2265_v61 }
 0x259   :  { %2164 = vpow2.f32 %v417_v36  ;;  %v42_v36 = vld [vmem:[%s2897_s1 + $0x28] sm:$0xff] }
 0x25a   :  { %2166 = vpow2.f32 %v1699_v41  ;;  %v45_v41 = vld [vmem:[%s2897_s1 + $0x40] sm:$0xff] }
 0x25b   :  { %2168 = vpow2.f32 %v1698_v42  ;;  %2022 = vmatpush1.bf16.msra.mxu0 %v2021_v32  ;;  %v48_v42 = vld [vmem:[%s2897_s1 + $0x58] sm:$0xff] }
 0x25c   :  { %2097 = vmatprep.subr.bf16.mxu0 %v2265_v61 }
 0x25e   :  { %193 = vmatmul.mubr.f32.vlgmr.msra.gmra.mrb[0].mxu0 %v37_v33  ;;  %v2267_v33 = vmov 0.0  }
 0x25f   :  { %v2163_v37 = vpop.eup %2162  ;;  %1679 = vmatprep.mubr.msk.f32.mxu0 %vm73_vm5, %v40_v34 }
 0x260   :  { %v419_v38 = vsel %vm394_vm1, %v2163_v37, 0.0  ;;  %v41_v37 = vld [vmem:[%s2897_s1 + $0x20] sm:$0xff] }
 0x261   :  { %423 = vrot.lane.b32.xlu0 %v419_v38, %s2263_s17 }
 0x262   :  { %198 = vmatmul.mubr.f32.gmra.mrb[2].mxu0 %v39_v35 }
 0x263   :  { %v2165_v39 = vpop.eup %2164  ;;  %1680 = vmatprep.mubr.msk.f32.mxu0 %vm73_vm5, %v42_v36 }
 0x264   :  { %v420_v40 = vsel %vm395_vm3, %v2165_v39, 0.0  ;;  %v2167_v46 = vpop.eup %2166  ;;  %v43_v39 = vld [vmem:[%s2897_s1 + $0x30] sm:$0xff] }
 0x265   :  { %425 = vrot.lane.b32.xlu1 %v420_v40, %s2263_s17  ;;  %v2169_v48 = vpop.eup %2168  ;;  %v389_v49 = vadd.f32 1.0, %v2167_v46  ;;  %v52_v46 = vld [vmem:[%s2897_s1 + $0x78] sm:$0xff] }
 0x266   :  { %v388_v50 = vadd.f32 1.0, %v2169_v48  ;;  %203 = vmatmul.mubr.f32.gmra.mrb[4].mxu0 %v41_v37  ;;  %v54_v48 = vld [vmem:[%s2897_s1 + $0x88] sm:$0xff] }
 0x267   :  { %2170 = vrcp.f32 %v389_v49  ;;  %v53_v49 = vld [vmem:[%s2897_s1 + $0x80] sm:$0xff] }
 0x268   :  { %2172 = vrcp.f32 %v388_v50  ;;  %v56_v50 = vld [vmem:[%s2897_s1 + $0x98] sm:$0xff] }
 0x271   :  { %v2171_v51 = vpop.eup %2170 }
 0x272   :  { %v2173_v52 = vpop.eup %2172 }
 0x2d3   :  { %v424_v43 = vpop.permute.xlu0 %423 }
 0x2d4   :  { %v430_v44 = vsel %vm429_vm4, %v424_v43, 0.0  ;;  %v47_v43 = vld [vmem:[%s2897_s1 + $0x50] sm:$0xff] }
 0x2d5   :  { %431 = vadd.xlane.f32.xlu0 %v430_v44  ;;  %v50_v44 = vld [vmem:[%s2897_s1 + $0x68] sm:$0xff] }
 0x2d7   :  { %v426_v45 = vpop.permute.xlu1 %425 }
 0x2d8   :  { %v433_v47 = vsel %vm429_vm4, %v426_v45, 0.0  ;;  %v49_v45 = vld [vmem:[%s2897_s1 + $0x60] sm:$0xff] }
 0x2d9   :  { %434 = vadd.xlane.f32.xlu1 %v433_v47  ;;  %v51_v47 = vld [vmem:[%s2897_s1 + $0x70] sm:$0xff] }
 0x2ea   :  { %446 = vrot.lane.b32.xlu1 %v2171_v51, %s2264_s18  ;;  %v55_v51 = vld [vmem:[%s2897_s1 + $0x90] sm:$0xff] }
 0x2eb   :  { %444 = vrot.lane.b32.xlu0 %v2173_v52, %s2264_s18 }
 0x362   :  { %v432_v54 = vpop.xlane.xlu0 %431 }
 0x363   :  { %v436_v55 = vadd.f32 1e-09, %v432_v54  ;;  %v58_v54 = vld [vmem:[%s2897_s1 + $0xa8] sm:$0xff] }
 0x365   :  { %2174 = vrcp.f32 %v436_v55  ;;  %v57_v55 = vld [vmem:[%s2897_s1 + $0xa0] sm:$0xff] }
 0x366   :  { %v435_v56 = vpop.xlane.xlu1 %434  ;;  %v445_v7 = vpop.permute.xlu0 %444 }
 0x367   :  { %v437_v57 = vadd.f32 1e-09, %v435_v56  ;;  %v60_v56 = vld [vmem:[%s2897_s1 + $0xb8] sm:$0xff] }
 0x369   :  { %2176 = vrcp.f32 %v437_v57  ;;  %v59_v57 = vld [vmem:[%s2897_s1 + $0xb0] sm:$0xff] }
 0x36a   :  { %v447_v15 = vpop.permute.xlu1 %446 }
 0x36f   :  { %v2175_v2 = vpop.eup %2174 }
 0x370   :  { %v440_v6 = vmul.f32 %v2175_v2, %v419_v38  ;;  %v44_v38 = vld [vmem:[%s2897_s1 + $0x38] sm:$0xff] }
 0x371   :  { %1681 = vmatprep.mubr.msk.f32.mxu0 %vm73_vm5, %v44_v38  ;;  %v68_v2 = vld [vmem:[%s2897_s1 + $0xf8] sm:$0xff] }
 0x372   :  { %v450_v9 = vmul.f32 %v445_v7, %v440_v6  ;;  %208 = vmatmul.mubr.f32.gmra.mrb[6].mxu0 %v43_v39  ;;  %v69_v6 = vld [vmem:[%s2897_s1 + $0x100] sm:$0xff]  ;;  %v72_v7 = vld [vmem:[%s2897_s1 + $0x118] sm:$0xff] }
 0x373   :  { %v2177_v11 = vpop.eup %2176 }
 0x374   :  { %v441_v14 = vmul.f32 %v2177_v11, %v420_v40  ;;  %455 = vrot.lane.b32.xlu0 %v450_v9, %s2263_s17  ;;  %v46_v40 = vld [vmem:[%s2897_s1 + $0x48] sm:$0xff]  ;;  %v194_v9 = vpop.f32.mrb[0].mxu0 }
 0x375   :  { %1682 = vmatprep.mubr.msk.f32.mxu0 %vm73_vm5, %v46_v40  ;;  %v196_v10 = vpop.f32.mrb[1].mxu0 }
 0x376   :  { %v451_v16 = vmul.f32 %v447_v15, %v441_v14  ;;  %213 = vmatmul.mubr.f32.gmra.mrb[8].mxu0 %v45_v41  ;;  %v199_v11 = vpop.f32.mrb[2].mxu0 }
 0x377   :  { %1683 = vmatprep.mubr.msk.f32.mxu0 %vm73_vm5, %v48_v42  ;;  %v2048_v12 = vpack.c.bf16 %v199_v11, %v194_v9  ;;  %v201_v13 = vpop.f32.mrb[3].mxu0  ;;  %v883_v9 = vld [vmem:[%s2898_s2 + $0x138] sm:$0xff]  ;;  %v884_v11 = vld [vmem:[%s2898_s2 + $0x140] sm:$0xff] }
 0x378   :  { %457 = vrot.lane.b32.xlu1 %v451_v16, %s2263_s17  ;;  %v204_v14 = vpop.f32.mrb[4].mxu0 }
 0x379   :  { %v206_v15 = vpop.f32.mrb[5].mxu0 }
 0x37a   :  { %218 = vmatmul.mubr.f32.gmra.mrb[10].mxu0 %v47_v43  ;;  %v887_v15 = vld [vmem:[%s2898_s2 + $0x158] sm:$0xff] }
 0x37b   :  { %1684 = vmatprep.mubr.msk.f32.mxu0 %vm73_vm5, %v50_v44 }
 0x37e   :  { %223 = vmatmul.mubr.f32.gmra.mrb[12].mxu0 %v49_v45 }
 0x37f   :  { %1685 = vmatprep.mubr.msk.f32.mxu0 %vm73_vm5, %v52_v46 }
 0x382   :  { %228 = vmatmul.mubr.f32.gmra.mrb[14].mxu0 %v51_v47 }
 0x383   :  { %1686 = vmatprep.mubr.msk.f32.mxu0 %vm73_vm5, %v54_v48 }
 0x386   :  { %233 = vmatmul.mubr.f32.gmra.mrb[16].mxu0 %v53_v49 }
 0x387   :  { %1687 = vmatprep.mubr.msk.f32.mxu0 %vm73_vm5, %v56_v50 }
 0x38a   :  { %238 = vmatmul.mubr.f32.gmra.mrb[18].mxu0 %v55_v51 }
 0x38b   :  { %1688 = vmatprep.mubr.msk.f32.mxu0 %vm73_vm5, %v58_v54 }
 0x38e   :  { %243 = vmatmul.mubr.f32.gmra.mrb[20].mxu0 %v57_v55 }
 0x38f   :  { %1689 = vmatprep.mubr.msk.f32.mxu0 %vm73_vm5, %v60_v56 }
 0x392   :  { %248 = vmatmul.mubr.f32.gmra.mrb[22].mxu0 %v59_v57 }
 0x393   :  { %1690 = vmatprep.mubr.msk.f32.mxu0 %vm73_vm5, %v62_v58 }
 0x396   :  { %253 = vmatmul.mubr.f32.gmra.mrb[24].mxu0 %v61_v59 }
 0x397   :  { %1691 = vmatprep.mubr.msk.f32.mxu0 %vm73_vm5, %v64_v60 }
 0x39a   :  { %258 = vmatmul.mubr.f32.gmra.mrb[26].mxu0 %v63_v62  ;;  %v708_v62 = vld [vmem:[%s2898_s2 + $0x108] sm:$0xff] }
 0x39b   :  { %1692 = vmatprep.mubr.msk.f32.mxu0 %vm73_vm5, %v66_v63  ;;  %v709_v63 = vld [vmem:[%s2898_s2 + $0x110] sm:$0xff] }
 0x39e   :  { %263 = vmatmul.mubr.f32.gmra.mrb[28].mxu0 %v65_v1 }
 0x39f   :  { %1693 = vmatprep.mubr.msk.f32.mxu0 %vm73_vm5, %v68_v2  ;;  %v710_v2 = vld [vmem:[%s2898_s2 + $0x118] sm:$0xff] }
 0x3a2   :  { %268 = vmatmul.mubr.f32.gmra.mrb[30].mxu0 %v67_v3  ;;  %v2075_v3 = vpack.c.bf16 %v710_v2, %v709_v63  ;;  %v2697_v2 = vld [vmem:[%s2896_s0 + $0x18] sm:$0xff] }
 0x3a3   :  { %1694 = vmatprep.mubr.msk.f32.mxu0 %vm73_vm5, %v70_v4  ;;  %v880_v4 = vld [vmem:[%s2898_s2 + $0x120] sm:$0xff]  ;;  %vm1041_vm11 = vcmp.gt.f32.partialorder %v2697_v2, 0.0 }
 0x3a6   :  { %273 = vmatmul.mubr.f32.gmra.mrb[32].mxu0 %v69_v6  ;;  %v881_v6 = vld [vmem:[%s2898_s2 + $0x128] sm:$0xff] }
 0x3a7   :  { %1695 = vmatprep.mubr.msk.f32.mxu0 %vm73_vm5, %v72_v7  ;;  %v2080_v7 = vpack.c.bf16 %v881_v6, %v880_v4 }
 0x3a9   :  { %2099 = vmatpush3.bf16.msra.mxu0 %v2080_v7 }
 0x3aa   :  { %278 = vmatmul.mubr.f32.gmra.mrb[34].mxu0 %v71_v8  ;;  %2100 = vmatprep.subr.bf16.mxu0 %v2265_v61  ;;  %v882_v8 = vld [vmem:[%s2898_s2 + $0x130] sm:$0xff] }
 0x3ab   :  { %1947 = vmatprep.mubr.msk.f32.mxu0 %vm2268_vm6, %v2267_v33  ;;  %v2083_v10 = vpack.c.bf16 %v883_v9, %v882_v8 }
 0x3ad   :  { %2102 = vmatpush3.bf16.msra.mxu0 %v2083_v10 }
 0x3ae   :  { %2103 = vmatprep.subr.bf16.mxu0 %v2265_v61 }
 0x3e6   :  { %v456_v52 = vpop.permute.xlu0 %455 }
 0x3e7   :  { %1840 = vmatprep.mubr.msk.f32.mxu1 %vm429_vm4, %v456_v52 }
 0x3ea   :  { %v458_v53 = vpop.permute.xlu1 %457 }
 0x3eb   :  { %1841 = vmatmul.mubr.msk.f32.vlgmr.msra.gmra.mrb[2].mxu1 %vm429_vm4, %v458_v53 }
 0x3ec   :  { %2049 = vmatpush3.bf16.msra.mxu1 %v2048_v12  ;;  %1861 = vmatprep.mubr.msk.f32.mxu1 %vm2268_vm6, %v2267_v33  ;;  %v885_v12 = vld [vmem:[%s2898_s2 + $0x148] sm:$0xff] }
 0x3ed   :  { %2050 = vmatprep.subr.bf16.mxu1 %v2265_v61  ;;  %v2086_v13 = vpack.c.bf16 %v885_v12, %v884_v11 }
 0x3ef   :  { %2105 = vmatpush3.bf16.msra.mxu0 %v2086_v13 }
 0x3f0   :  { %2106 = vmatprep.subr.bf16.mxu0 %v2265_v61 }
 0x445   :  { %v209_v16 = vpop.f32.mrb[6].mxu0 }
 0x446   :  { %v2051_v17 = vpack.c.bf16 %v209_v16, %v204_v14  ;;  %v211_v18 = vpop.f32.mrb[7].mxu0  ;;  %v886_v14 = vld [vmem:[%s2898_s2 + $0x150] sm:$0xff] }
 0x447   :  { %v2089_v16 = vpack.c.bf16 %v887_v15, %v886_v14  ;;  %v889_v18 = vld [vmem:[%s2898_s2 + $0x168] sm:$0xff]  ;;  %v2274_v15 = vmov 1966171168  }
 0x448   :  { %2052 = vmatpush3.bf16.msra.mxu1 %v2051_v17  ;;  %v888_v17 = vld [vmem:[%s2898_s2 + $0x160] sm:$0xff] }
 0x449   :  { %v214_v19 = vpop.f32.mrb[8].mxu0  ;;  %2053 = vmatprep.subr.bf16.mxu1 %v2265_v61  ;;  %2108 = vmatpush3.bf16.msra.mxu0 %v2089_v16 }
 0x44a   :  { %v216_v21 = vpop.f32.mrb[9].mxu0  ;;  %2109 = vmatprep.subr.bf16.mxu0 %v2265_v61 }
 0x44b   :  { %v891_v21 = vld [vmem:[%s2898_s2 + $0x178] sm:$0xff] }
 0x44d   :  { %v219_v23 = vpop.f32.mrb[10].mxu0 }
 0x44e   :  { %v2054_v24 = vpack.c.bf16 %v219_v23, %v214_v19  ;;  %v221_v25 = vpop.f32.mrb[11].mxu0  ;;  %v2092_v19 = vpack.c.bf16 %v889_v18, %v888_v17  ;;  %v999_v17 = vlaneseq }
 0x450   :  { %2055 = vmatpush3.bf16.msra.mxu1 %v2054_v24  ;;  %2111 = vmatpush3.bf16.msra.mxu0 %v2092_v19 }
 0x451   :  { %v224_v26 = vpop.f32.mrb[12].mxu0  ;;  %2056 = vmatprep.subr.bf16.mxu1 %v2265_v61  ;;  %2112 = vmatprep.subr.bf16.mxu0 %v2265_v61 }
 0x452   :  { %v226_v27 = vpop.f32.mrb[13].mxu0 }
 0x455   :  { %v229_v28 = vpop.f32.mrb[14].mxu0 }
 0x456   :  { %v2057_v29 = vpack.c.bf16 %v229_v28, %v224_v26  ;;  %v231_v30 = vpop.f32.mrb[15].mxu0 }
 0x458   :  { %2058 = vmatpush3.bf16.msra.mxu1 %v2057_v29 }
 0x459   :  { %v234_v31 = vpop.f32.mrb[16].mxu0  ;;  %1859 = vmatprep.subr.mxu1 %v2267_v33 }
 0x45a   :  { %v236_v32 = vpop.f32.mrb[17].mxu0 }
 0x45c   :  { %1860 = vmatpush3.msra.mxu1 %v234_v31  ;;  %v1706_v31 = vld [vmem:[%s2898_s2 + $0x1c0] ss:$0 sm:$0xff] }
 0x45d   :  { %v239_v34 = vpop.f32.mrb[18].mxu0  ;;  %2059 = vmatprep.subr.bf16.mxu1 %v2265_v61 }
 0x45e   :  { %v241_v35 = vpop.f32.mrb[19].mxu0 }
 0x461   :  { %v244_v36 = vpop.f32.mrb[20].mxu0 }
 0x462   :  { %v2060_v37 = vpack.c.bf16 %v244_v36, %v239_v34  ;;  %v246_v38 = vpop.f32.mrb[21].mxu0 }
 0x465   :  { %v249_v39 = vpop.f32.mrb[22].mxu0 }
 0x466   :  { %v251_v40 = vpop.f32.mrb[23].mxu0 }
 0x469   :  { %v254_v41 = vpop.f32.mrb[24].mxu0 }
 0x46a   :  { %v2063_v42 = vpack.c.bf16 %v254_v41, %v249_v39  ;;  %v256_v43 = vpop.f32.mrb[25].mxu0  ;;  %v2271_v41 = vmov 0  }
 0x46b   :  { %2160 = vset.pattern.permute.xlu0 %v2271_v41  ;;  %2161 = vset.pattern.permute.xlu1 %v2271_v41 }
 0x46d   :  { %v259_v44 = vpop.f32.mrb[26].mxu0 }
 0x46e   :  { %v261_v45 = vpop.f32.mrb[27].mxu0 }
 0x471   :  { %v264_v46 = vpop.f32.mrb[28].mxu0 }
 0x472   :  { %v2066_v47 = vpack.c.bf16 %v264_v46, %v259_v44  ;;  %v266_v48 = vpop.f32.mrb[29].mxu0 }
 0x475   :  { %v269_v49 = vpop.f32.mrb[30].mxu0 }
 0x476   :  { %v271_v50 = vpop.f32.mrb[31].mxu0 }
 0x479   :  { %v274_v51 = vpop.f32.mrb[32].mxu0 }
 0x47a   :  { %v2069_v52 = vpack.c.bf16 %v274_v51, %v269_v49  ;;  %v276_v53 = vpop.f32.mrb[33].mxu0 }
 0x47d   :  { %v279_v58 = vpop.f32.mrb[34].mxu0 }
 0x47e   :  { %v281_v59 = vpop.f32.mrb[35].mxu0 }
 0x47f   :  { %v2689_v59 = vld [vmem:[%s2896_s0 + $0x8] sm:$0xff]  ;;  %s2275_s0 = smov 96  }
 0x480   :  { %vm1040_vm9 = vcmp.gt.f32.partialorder %v2689_v59, 0.0 }
 0x4be   :  { %v1842_v20 = vpop.f32.mrb[2].mxu1 }
 0x4bf   :  { %542 = vrot.lane.b32.xlu1 %v1842_v20, %s2266_s25  ;;  %v529_v22 = vpop.f32.mrb[3].mxu1  ;;  %v890_v20 = vld [vmem:[%s2898_s2 + $0x170] sm:$0xff] }
 0x4c0   :  { %540 = vrot.lane.b32.xlu0 %v529_v22, %s2266_s25  ;;  %v2095_v22 = vpack.c.bf16 %v891_v21, %v890_v20 }
 0x4c2   :  { %2114 = vmatpush3.bf16.msra.mxu0 %v2095_v22 }
 0x4c3   :  { %2133 = vmatprep.subr.bf16.mxu0 %v2265_v61 }
 0x531   :  { %v543_v54 = vpop.permute.xlu1 %542 }
 0x532   :  { %v547_v55 = vmul.f32 %v543_v54, %v2319_v5  ;;  %v541_v56 = vpop.permute.xlu0 %540 }
 0x533   :  { %v546_v57 = vmul.f32 %v541_v56, %v2300_v0 }
 0x534   :  { %625 = vrot.lane.b32.xlu1 %v547_v55, %s2262_s16 }
 0x535   :  { %549 = vrot.lane.b32.xlu0 %v546_v57, %s2262_s16 }
 0x538   :  { %701 = vrot.lane.b32.xlu1 %v2319_v5, %s2266_s25 }
 0x539   :  { %699 = vrot.lane.b32.xlu0 %v2300_v0, %s2266_s25  ;;  %v707_v0 = vld [vmem:[%s2898_s2 + $0x100] sm:$0xff] }
 0x53a   :  { %v2071_v1 = vpack.c.bf16 %v708_v62, %v707_v0 }
 0x5a6   :  { %v626_v5 = vpop.permute.xlu1 %625 }
 0x5a7   :  { %v550_v60 = vpop.permute.xlu0 %549 }
 0x5a8   :  { %1862 = vmatmul.mubr.msk.f32.vlgmr.msra.gmra.mrb[4].mxu1 %vm551_vm7, %v550_v60 }
 0x5a9   :  { %2061 = vmatpush3.bf16.msra.mxu1 %v2060_v37  ;;  %1882 = vmatprep.mubr.msk.f32.mxu1 %vm2268_vm6, %v2267_v33  ;;  %v2679_v37 = vld [vmem:[%s2898_s2 + $0x1c1] ss:$0 sm:$0xff] }
 0x5aa   :  { %2062 = vmatprep.subr.bf16.mxu1 %v2265_v61  ;;  %v2649_v27 = vpop.permute.xlu1 %701 }
 0x5ab   :  { %v2644_v23 = vpop.permute.xlu0 %699 }
 0x5ad   :  { %2064 = vmatpush3.bf16.msra.mxu1 %v2063_v42 }
 0x5ae   :  { %2065 = vmatprep.subr.bf16.mxu1 %v2265_v61 }
 0x5b1   :  { %2067 = vmatpush3.bf16.msra.mxu1 %v2066_v47 }
 0x5b2   :  { %2068 = vmatprep.subr.bf16.mxu1 %v2265_v61 }
 0x5b5   :  { %2070 = vmatpush3.bf16.msra.mxu1 %v2069_v52 }
 0x5b6   :  { %1880 = vmatprep.subr.mxu1 %v2267_v33 }
 0x5b9   :  { %1881 = vmatpush3.msra.mxu1 %v279_v58 }
 0x5ba   :  { %1883 = vmatmul.mubr.msk.f32.vlgmr.msra.gmra.mrb[6].mxu1 %vm551_vm7, %v626_v5  ;;  %2072 = vmatprep.subr.bf16.mxu1 %v2071_v1 }
 0x5bb   :  { %2074 = vmatpush3.bf16.msra.mxu1 %v2071_v1 }
 0x5bc   :  { %2076 = vmatprep.subr.bf16.mxu1 %v2075_v3 }
 0x5bf   :  { %2078 = vmatpush3.bf16.msra.mxu1 %v2075_v3 }
 0x5c0   :  { %2079 = vmatprep.subr.bf16.mxu1 %v2265_v61 }
 0x67b   :  { %v620_v24 = vpop.f32.mrb[4].mxu1 }
 0x67c   :  { %v1863_v25 = vpop.f32.mrb[5].mxu1  ;;  %v705_v26 = vsel %vm73_vm5, %v620_v24, %v2644_v23 }
 0x67d   :  { %1893 = vmatprep.mubr.msk.f32.mxu1 %vm711_vm8, %v705_v26  ;;  %v1000_v25 = vshrl.u32 %v999_v17, 7 }
 0x68d   :  { %v695_v28 = vpop.f32.mrb[6].mxu1 }
 0x68e   :  { %v706_v29 = vsel %vm73_vm5, %v695_v28, %v2649_v27  ;;  %v1884_v30 = vpop.f32.mrb[7].mxu1 }
 0x68f   :  { %1894 = vmatmul.mubr.msk.f32.vlgmr.msra.gmra.mrb[8].mxu1 %vm711_vm8, %v706_v29 }
 0x690   :  { %2081 = vmatpush3.bf16.msra.mxu1 %v2080_v7  ;;  %1920 = vmatprep.mubr.msk.f32.mxu1 %vm2268_vm6, %v2267_v33 }
 0x691   :  { %2082 = vmatprep.subr.bf16.mxu1 %v2265_v61 }
 0x694   :  { %2084 = vmatpush3.bf16.msra.mxu1 %v2083_v10 }
 0x695   :  { %2085 = vmatprep.subr.bf16.mxu1 %v2265_v61 }
 0x698   :  { %2087 = vmatpush3.bf16.msra.mxu1 %v2086_v13 }
 0x699   :  { %2088 = vmatprep.subr.bf16.mxu1 %v2265_v61 }
 0x69c   :  { %2090 = vmatpush3.bf16.msra.mxu1 %v2089_v16 }
 0x69d   :  { %2091 = vmatprep.subr.bf16.mxu1 %v2265_v61 }
 0x6a0   :  { %2093 = vmatpush3.bf16.msra.mxu1 %v2092_v19 }
 0x6a1   :  { %2094 = vmatprep.subr.bf16.mxu1 %v2265_v61 }
 0x6a4   :  { %2096 = vmatpush3.bf16.msra.mxu1 %v2095_v22 }
 0x6a5   :  { %2115 = vmatprep.subr.bf16.mxu1 %v2265_v61 }
 0x6a7   :  { %1921 = vmatmul.mubr.f32.vlgmr.msra.gmra.mrb[10].mxu1 %v2267_v33 }
 0x6a8   :  { %2117 = vmatpush3.bf16.msra.mxu1 %v2080_v7  ;;  %1974 = vmatprep.mubr.msk.f32.mxu1 %vm2268_vm6, %v2267_v33 }
 0x6a9   :  { %2118 = vmatprep.subr.bf16.mxu1 %v2265_v61 }
 0x6ac   :  { %2120 = vmatpush3.bf16.msra.mxu1 %v2083_v10 }
 0x6ad   :  { %2121 = vmatprep.subr.bf16.mxu1 %v2265_v61 }
 0x6b0   :  { %2123 = vmatpush3.bf16.msra.mxu1 %v2086_v13 }
 0x6b1   :  { %2124 = vmatprep.subr.bf16.mxu1 %v2265_v61 }
 0x6b4   :  { %2126 = vmatpush3.bf16.msra.mxu1 %v2089_v16  ;;  %v997_v16 = vunpack.c.l.s4 %v2274_v15 }
 0x6b5   :  { %2127 = vmatprep.subr.bf16.mxu1 %v2265_v61 }
 0x6b6   :  { %v998_v24 = vunpack.c.0.s8 %v997_v16 }
 0x6b8   :  { %2129 = vmatpush3.bf16.msra.mxu1 %v2092_v19  ;;  %v2708_v28 = vsub.s32 %v998_v24, %v1000_v25 }
 0x6b9   :  { %2130 = vmatprep.subr.bf16.mxu1 %v2265_v61 }
 0x6bc   :  { %2132 = vmatpush3.bf16.msra.mxu1 %v2095_v22 }
 0x762   :  { %v1895_v32 = vpop.f32.mrb[8].mxu1 }
 0x763   :  { %v2673_v34 = vadd.f32 %v1895_v32, %v1706_v31  ;;  %v784_v35 = vpop.f32.mrb[9].mxu1 }
 0x764   :  { %v798_v36 = vadd.f32 %v1706_v31, %v784_v35  ;;  %v2715_v35 = vsub.s32 0, %v1000_v25 }
 0x765   :  { %804 = vrot.lane.b32.xlu1 %v2673_v34, %s2269_s5 }
 0x766   :  { %802 = vrot.lane.b32.xlu0 %v798_v36, %s2269_s5  ;;  %s2276_s5 = smov [#allocation2]  }
 0x769   :  { %822 = vrot.lane.b32.xlu1 %v798_v36, %s2270_s6 }
 0x77a   :  { %v967_v38 = vpop.f32.mrb[10].mxu1 }
 0x77b   :  { %v968_v39 = vadd.f32 %v2679_v37, %v967_v38  ;;  %v1922_v40 = vpop.f32.mrb[11].mxu1 }
 0x77d   :  { %2178 = vtanh.f32 %v968_v39  ;;  %v1710_v46 = vmul.f32 -1.442695, %v968_v39 }
 0x787   :  { %v2179_v42 = vpop.eup %2178 }
 0x788   :  { %980 = vrot.lane.b32.xlu0 %v2179_v42, %s2272_s9 }
 0x78c   :  { %824 = vrot.lane.b32.xlu0 %v2673_v34, %s2270_s6  ;;  %s1670_s6 = sshll.u32 %s2276_s5, 4  ;;  %s1671_s6 = int_to_ptr.vmem [resolvable:$true] %s1670_s6 }
 0x78d   :  { %s2238_s7 = scalar_lea.vmem %s1671_s6, 32  ;;  %p2243_p1 = scmp.lt.s32.totalorder %s1671_s6, %s1671_s6 }
 0x78e   :  { %p2239_p0 = scmp.ne.s32.totalorder %s1671_s6, %s2238_s7  ;;  %p2244_p2 = scmp.lt.s32.totalorder %s2238_s7, %s2238_s7 }
 0x790   :  { %p2245_p3 = por %p2244_p2, %p2243_p1 }
 0x792   :  { %p2246_p4 = pnand %p2245_p3, %p2239_p0 }
 0x7d7   :  { %v805_v43 = vpop.permute.xlu1 %804 }
 0x7d8   :  { %v803_v44 = vpop.permute.xlu0 %802  ;;  %v809_v47 = vadd.f32 %v805_v43, %v2673_v34 }
 0x7d9   :  { %v808_v45 = vadd.f32 %v803_v44, %v798_v36 }
 0x7da   :  { %v1708_v49 = vmul.f32 -1.442695, %v809_v47 }
 0x7db   :  { %v1707_v48 = vmul.f32 -1.442695, %v808_v45  ;;  %v823_v57 = vpop.permute.xlu1 %822 }
 0x7dd   :  { %2180 = vpow2.f32 %v1707_v48 }
 0x7de   :  { %2182 = vpow2.f32 %v1710_v46 }
 0x7df   :  { %2184 = vpow2.f32 %v1708_v49 }
 0x7e7   :  { %v2181_v50 = vpop.eup %2180 }
 0x7e8   :  { %v816_v51 = vadd.f32 1.0, %v2181_v50  ;;  %v2183_v52 = vpop.eup %2182 }
 0x7e9   :  { %v974_v53 = vadd.f32 1.0, %v2183_v52  ;;  %v2185_v54 = vpop.eup %2184 }
 0x7ea   :  { %2186 = vrcp.f32 %v816_v51  ;;  %v817_v55 = vadd.f32 1.0, %v2185_v54 }
 0x7eb   :  { %2188 = vrcp.f32 %v974_v53 }
 0x7ec   :  { %2190 = vrcp.f32 %v817_v55 }
 0x7f4   :  { %v2187_v56 = vpop.eup %2186 }
 0x7f5   :  { %v828_v58 = vmul.f32 %v2187_v56, %v823_v57  ;;  %v2189_v60 = vpop.eup %2188  ;;  %v842_v18 = vsub.f32 1.0, %v2187_v56  ;;  %v854_v21 = vmul.f32 %v2187_v56, %v2644_v23 }
 0x7f6   :  { %v2191_v62 = vpop.eup %2190  ;;  %v978_v6 = vmul.f32 0.0, %v2189_v60 }
 0x7f7   :  { %832 = vrot.lane.b32.xlu0 %v828_v58, %s2273_s10  ;;  %v855_v39 = vmul.f32 %v2191_v62, %v2649_v27 }
 0x7fa   :  { %v981_v5 = vpop.permute.xlu0 %980 }
 0x7fb   :  { %v983_v0 = vmul.f32 %v2189_v60, %v981_v5  ;;  %860 = vperm.xlu0 %2160, %v2689_v59  }
 0x7fd   :  { %985 = vrot.lane.b32.xlu1 %v983_v0, %s2273_s10 }
 0x7fe   :  { %v825_v63 = vpop.permute.xlu0 %824 }
 0x7ff   :  { %v829_v1 = vmul.f32 %v2191_v62, %v825_v63 }
 0x801   :  { %834 = vrot.lane.b32.xlu1 %v829_v1, %s2273_s10 }
 0x805   :  { %865 = vperm.xlu1 %2161, %v2697_v2  }
 0x869   :  { %v833_v3 = vpop.permute.xlu0 %832 }
 0x86a   :  { %v838_v4 = vadd.f32 %v833_v3, %v798_v36 }
 0x86c   :  { %2192 = vtanh.f32 %v838_v4 }
 0x86f   :  { %v986_v7 = vpop.permute.xlu1 %985 }
 0x870   :  { %v2700_v8 = vadd.f32 %v986_v7, %v978_v6 }
 0x872   :  { %2194 = vtanh.f32 %v2700_v8 }
 0x873   :  { %v835_v9 = vpop.permute.xlu1 %834 }
 0x874   :  { %v839_v10 = vadd.f32 %v835_v9, %v2673_v34  ;;  %v843_v34 = vsub.f32 1.0, %v2191_v62 }
 0x876   :  { %v2193_v11 = vpop.eup %2192  ;;  %2196 = vtanh.f32 %v839_v10 }
 0x877   :  { %846 = vrot.lane.b32.xlu0 %v2193_v11, %s2262_s16 }
 0x87a   :  { %v861_v14 = vpop.permute.xlu0 %860 }
 0x87c   :  { %v2195_v12 = vpop.eup %2194 }
 0x87d   :  { %991 = vrot.lane.b32.xlu1 %v2195_v12, %s2272_s9 }
 0x880   :  { %v2197_v13 = vpop.eup %2196 }
 0x881   :  { %848 = vrot.lane.b32.xlu1 %v2197_v13, %s2262_s16 }
 0x884   :  { %v866_v20 = vpop.permute.xlu1 %865 }
 0x8e9   :  { %v847_v19 = vpop.permute.xlu0 %846 }
 0x8ea   :  { %v852_v22 = vmul.f32 %v847_v19, %v842_v18 }
 0x8ec   :  { %v856_v26 = vadd.f32 %v854_v21, %v852_v22 }
 0x8ee   :  { %v868_v29 = vmul.f32 %v861_v14, %v856_v26 }
 0x8ef   :  { %v992_v30 = vpop.permute.xlu1 %991 }
 0x8f0   :  { %v2710_v31 = vmul.f32 %v2189_v60, %v992_v30  ;;  %872 = vrot.lane.b32.xlu0 %v868_v29, %s2262_s16 }
 0x8f2   :  { %v1002_v32 = vrot.slane %v2710_v31, %v2708_v28 }
 0x8f3   :  { %v849_v36 = vpop.permute.xlu1 %848 }
 0x8f4   :  { %v1003_v38 = vcombine.high %v1002_v32, %v1002_v32  ;;  %v853_v40 = vmul.f32 %v849_v36, %v843_v34  ;;  %v1010_v41 = vrot.slane %v1002_v32, %v2708_v28 }
 0x8f6   :  { %v857_v42 = vadd.f32 %v855_v39, %v853_v40  ;;  %v1021_v43 = vrot.slane %v1010_v41, %v2715_v35  ;;  %v1017_v45 = vrot.slane %v1003_v38, %v2708_v28 }
 0x8f8   :  { %1026 = vrot.lane.b32.xlu0 %v1021_v43, %s2273_s10  ;;  %v869_v44 = vmul.f32 %v866_v20, %v857_v42  ;;  %v1025_v46 = vrot.slane %v1017_v45, %v2715_v35 }
 0x8fa   :  { %874 = vrot.lane.b32.xlu1 %v869_v44, %s2262_s16 }
 0x8fe   :  { %1028 = vrot.lane.b32.xlu1 %v1025_v46, %s2273_s10 }
 0x962   :  { %v873_v47 = vpop.permute.xlu0 %872 }
 0x963   :  { %v2727_v48 = vsel %vm73_vm5, %v873_v47, %v2644_v23 }
 0x96a   :  { %v1027_v49 = vpop.permute.xlu0 %1026 }
 0x96b   :  { %v1032_v50 = vmul.f32 %v1027_v49, %v2727_v48 }
 0x96c   :  { %v875_v51 = vpop.permute.xlu1 %874 }
 0x96d   :  { %v1034_v52 = vsel %vm711_vm8, %v1032_v50, 0.0  ;;  %v2733_v53 = vsel %vm73_vm5, %v875_v51, %v2649_v27 }
 0x96e   :  { %1035 = vadd.xlane.f32.xlu0 %v1034_v52 }
 0x970   :  { %v1029_v54 = vpop.permute.xlu1 %1028 }
 0x971   :  { %v1033_v55 = vmul.f32 %v1029_v54, %v2733_v53 }
 0x973   :  { %v1037_v56 = vsel %vm711_vm8, %v1033_v55, 0.0 }
 0x974   :  { %1038 = vadd.xlane.f32.xlu1 %v1037_v56 }
 0x9fb   :  { %v1036_v23 = vpop.xlane.xlu0 %1035 }
 0x9fc   :  { %v1042_v57 = vsel %vm1040_vm9, %v1036_v23, -1e+09 }
 0x9fd   :  { %v1045_v58 = vsel %vm1044_vm10, %v1042_v57, -inf }
 0x9fe   :  { %v1046_v60 = vrot.slane %v1045_v58, 4 }
 0xa00   :  { %v1047_v27 = vmax.f32 %v1045_v58, %v1046_v60 }
 0xa01   :  { %v1039_v5 = vpop.xlane.xlu1 %1038 }
 0xa02   :  { %v1048_v0 = vrot.slane %v1047_v27, 2  ;;  %v1043_v62 = vsel %vm1041_vm11, %v1039_v5, -1e+09 }
 0xa03   :  { %v1052_v63 = vsel %vm1044_vm10, %v1043_v62, -inf }
 0xa04   :  { %v1049_v1 = vmax.f32 %v1047_v27, %v1048_v0  ;;  %v1053_v3 = vrot.slane %v1052_v63, 4 }
 0xa06   :  { %v1050_v4 = vrot.slane %v1049_v1, 1  ;;  %v1054_v6 = vmax.f32 %v1052_v63, %v1053_v3 }
 0xa08   :  { %v1051_v7 = vmax.f32 %v1049_v1, %v1050_v4  ;;  %v1055_v9 = vrot.slane %v1054_v6, 2 }
 0xa0a   :  { %v1059_v10 = vsub.f32 %v1042_v57, %v1051_v7  ;;  %v1056_v11 = vmax.f32 %v1054_v6, %v1055_v9 }
 0xa0c   :  { %v1061_v12 = vmul.f32 1.442695, %v1059_v10  ;;  %v1057_v13 = vrot.slane %v1056_v11, 1 }
 0xa0e   :  { %2198 = vpow2.f32 %v1061_v12  ;;  %v1058_v14 = vmax.f32 %v1056_v11, %v1057_v13 }
 0xa10   :  { %v1060_v15 = vsub.f32 %v1043_v62, %v1058_v14 }
 0xa12   :  { %v1063_v16 = vmul.f32 1.442695, %v1060_v15 }
 0xa14   :  { %2200 = vpow2.f32 %v1063_v16 }
 0xa18   :  { %v2199_v17 = vpop.eup %2198 }
 0xa19   :  { %v1065_v18 = vsel %vm1040_vm9, %v2199_v17, 0.0 }
 0xa1a   :  { %v1067_v19 = vsel %vm1044_vm10, %v1065_v18, 0.0 }
 0xa1b   :  { %v1068_v20 = vrot.slane %v1067_v19, 4 }
 0xa1d   :  { %v1069_v21 = vadd.f32 %v1068_v20, %v1067_v19 }
 0xa1e   :  { %v2201_v22 = vpop.eup %2200 }
 0xa1f   :  { %v1070_v24 = vrot.slane %v1069_v21, 2  ;;  %v1066_v25 = vsel %vm1041_vm11, %v2201_v22, 0.0 }
 0xa20   :  { %v1074_v26 = vsel %vm1044_vm10, %v1066_v25, 0.0 }
 0xa21   :  { %v1071_v29 = vadd.f32 %v1070_v24, %v1069_v21  ;;  %v1075_v30 = vrot.slane %v1074_v26, 4 }
 0xa23   :  { %v1072_v32 = vrot.slane %v1071_v29, 1  ;;  %v1076_v34 = vadd.f32 %v1075_v30, %v1074_v26 }
 0xa25   :  { %v1073_v36 = vadd.f32 %v1072_v32, %v1071_v29  ;;  %v1077_v38 = vrot.slane %v1076_v34, 2 }
 0xa27   :  { %v1081_v39 = vadd.f32 1e-09, %v1073_v36  ;;  %v1078_v40 = vadd.f32 %v1077_v38, %v1076_v34 }
 0xa29   :  { %2202 = vrcp.f32 %v1081_v39  ;;  %v1079_v41 = vrot.slane %v1078_v40, 1 }
 0xa2b   :  { %v1080_v42 = vadd.f32 %v1079_v41, %v1078_v40 }
 0xa2d   :  { %v1082_v43 = vadd.f32 1e-09, %v1080_v42 }
 0xa2f   :  { %2204 = vrcp.f32 %v1082_v43 }
 0xa33   :  { %v2203_v44 = vpop.eup %2202 }
 0xa34   :  { %v1085_v45 = vmul.f32 %v2203_v44, %v1065_v18 }
 0xa36   :  { %1089 = vperm.xlu0 %2160, %v1085_v45  }
 0xa39   :  { %v2205_v46 = vpop.eup %2204 }
 0xa3a   :  { %1113 = vrot.lane.b32.xlu0 %v2710_v31, %s2273_s10  ;;  %v1086_v47 = vmul.f32 %v2205_v46, %v1066_v25 }
 0xa3c   :  { %1094 = vperm.xlu1 %2161, %v1086_v47  }
 0xa3e   :  { %1124 = vrot.lane.b32.xlu0 %v2710_v31, %s2275_s0 }
 0xab5   :  { %v1090_v49 = vpop.permute.xlu0 %1089 }
 0xab6   :  { %v1097_v50 = vmul.f32 %v1090_v49, %v2727_v48 }
 0xab8   :  { %v1099_v51 = vsel %vm711_vm8, %v1097_v50, 0.0 }
 0xab9   :  { %v1100_v52 = vrot.slane %v1099_v51, 4  ;;  %v1114_v4 = vpop.permute.xlu0 %1113 }
 0xabb   :  { %v1101_v54 = vadd.f32 %v1100_v52, %v1099_v51  ;;  %v1095_v55 = vpop.permute.xlu1 %1094 }
 0xabc   :  { %v1098_v56 = vmul.f32 %v1095_v55, %v2733_v53 }
 0xabd   :  { %v1102_v23 = vrot.slane %v1101_v54, 2  ;;  %v1125_v7 = vpop.permute.xlu0 %1124 }
 0xabe   :  { %v1106_v57 = vsel %vm711_vm8, %v1098_v56, 0.0 }
 0xabf   :  { %v1107_v58 = vrot.slane %v1106_v57, 4  ;;  %v1103_v60 = vadd.f32 %v1102_v23, %v1101_v54 }
 0xac1   :  { %v1108_v27 = vadd.f32 %v1107_v58, %v1106_v57  ;;  %v1104_v0 = vrot.slane %v1103_v60, 1 }
 0xac3   :  { %v1109_v5 = vrot.slane %v1108_v27, 2  ;;  %v1105_v63 = vadd.f32 %v1104_v0, %v1103_v60 }
 0xac5   :  { %v1110_v62 = vadd.f32 %v1109_v5, %v1108_v27 }
 0xac7   :  { %v1111_v31 = vrot.slane %v1110_v62, 1 }
 0xac9   :  { %v1112_v1 = vadd.f32 %v1111_v31, %v1110_v62 }
 0xacb   :  { %v1119_v3 = vsel %vm1118_vm12, %v1112_v1, %v1105_v63 }
 0xacc   :  { %1120 = vrot.lane.b32.xlu1 %v1119_v3, %s2273_s10 }
 0xb3e   :  { %v1121_v6 = vpop.permute.xlu1 %1120 }
 0xb3f   :  { %v1123_v9 = vsel %vm711_vm8, %v1114_v4, %v1121_v6 }
 0xb40   :  { %v1128_v10 = vsel %vm1127_vm13, %v1123_v9, %v1125_v7 }
 0xb41   :  { %1948 = vmatmul.mubr.msk.f32.vlgmr.msra.gmra.mrb[36].mxu0 %vm897_vm14, %v1128_v10 }
 0xb42   :  { %1993 = vmatprep.mubr.msk.f32.mxu0 %vm2268_vm6, %v2267_v33 }
 0xc14   :  { %v1198_v11 = vpop.f32.mrb[36].mxu0 }
 0xc15   :  { %v1199_v12 = vadd.f32 %v2679_v37, %v1198_v11  ;;  %v1949_v13 = vpop.f32.mrb[37].mxu0 }
 0xc17   :  { %2206 = vtanh.f32 %v1199_v12  ;;  %v1712_v15 = vmul.f32 -1.442695, %v1199_v12 }
 0xc19   :  { %2208 = vpow2.f32 %v1712_v15 }
 0xc21   :  { %v2207_v14 = vpop.eup %2206 }
 0xc22   :  { %1211 = vrot.lane.b32.xlu1 %v2207_v14, %s2272_s9 }
 0xc23   :  { %v2209_v16 = vpop.eup %2208 }
 0xc24   :  { %v1205_v17 = vadd.f32 1.0, %v2209_v16 }
 0xc26   :  { %2210 = vrcp.f32 %v1205_v17 }
 0xc30   :  { %v2211_v18 = vpop.eup %2210 }
 0xc31   :  { %v1209_v33 = vmul.f32 %v2211_v18, %v2700_v8 }
 0xc94   :  { %v1212_v19 = vpop.permute.xlu1 %1211 }
 0xc95   :  { %v1214_v20 = vmul.f32 %v2211_v18, %v1212_v19 }
 0xc97   :  { %1216 = vrot.lane.b32.xlu0 %v1214_v20, %s2273_s10 }
 0xd09   :  { %v1217_v21 = vpop.permute.xlu0 %1216 }
 0xd0a   :  { %v2770_v22 = vadd.f32 %v1217_v21, %v1209_v33 }
 0xd0c   :  { %2212 = vtanh.f32 %v2770_v22 }
 0xd16   :  { %v2213_v24 = vpop.eup %2212 }
 0xd17   :  { %1222 = vrot.lane.b32.xlu1 %v2213_v24, %s2272_s9 }
 0xd89   :  { %v1223_v25 = vpop.permute.xlu1 %1222 }
 0xd8a   :  { %v2774_v26 = vmul.f32 %v2211_v18, %v1223_v25 }
 0xd8c   :  { %v1233_v29 = vrot.slane %v2774_v26, %v2708_v28 }
 0xd8e   :  { %v1234_v30 = vcombine.high %v1233_v29, %v1233_v29  ;;  %v1241_v32 = vrot.slane %v1233_v29, %v2708_v28 }
 0xd90   :  { %v1252_v34 = vrot.slane %v1241_v32, %v2715_v35  ;;  %v1248_v8 = vrot.slane %v1234_v30, %v2708_v28 }
 0xd92   :  { %1257 = vrot.lane.b32.xlu0 %v1252_v34, %s2273_s10  ;;  %v1256_v36 = vrot.slane %v1248_v8, %v2715_v35 }
 0xd94   :  { %1259 = vrot.lane.b32.xlu1 %v1256_v36, %s2273_s10 }
 0xe04   :  { %v1258_v38 = vpop.permute.xlu0 %1257 }
 0xe05   :  { %v1263_v39 = vmul.f32 %v1258_v38, %v2727_v48 }
 0xe06   :  { %v1260_v40 = vpop.permute.xlu1 %1259 }
 0xe07   :  { %v1264_v41 = vmul.f32 %v1260_v40, %v2733_v53  ;;  %v1265_v42 = vsel %vm711_vm8, %v1263_v39, 0.0 }
 0xe08   :  { %1266 = vadd.xlane.f32.xlu0 %v1265_v42 }
 0xe09   :  { %v1268_v43 = vsel %vm711_vm8, %v1264_v41, 0.0 }
 0xe0a   :  { %1269 = vadd.xlane.f32.xlu1 %v1268_v43 }
 0xe95   :  { %v1267_v44 = vpop.xlane.xlu0 %1266 }
 0xe96   :  { %v1271_v45 = vsel %vm1040_vm9, %v1267_v44, -1e+09 }
 0xe97   :  { %v1273_v46 = vsel %vm1044_vm10, %v1271_v45, -inf  ;;  %v1270_v47 = vpop.xlane.xlu1 %1269 }
 0xe98   :  { %v1274_v49 = vrot.slane %v1273_v46, 4  ;;  %v1272_v50 = vsel %vm1041_vm11, %v1270_v47, -1e+09 }
 0xe99   :  { %v1280_v51 = vsel %vm1044_vm10, %v1272_v50, -inf }
 0xe9a   :  { %v1275_v52 = vmax.f32 %v1273_v46, %v1274_v49  ;;  %v1281_v54 = vrot.slane %v1280_v51, 4 }
 0xe9c   :  { %v1276_v55 = vrot.slane %v1275_v52, 2  ;;  %v1282_v56 = vmax.f32 %v1280_v51, %v1281_v54 }
 0xe9e   :  { %v1277_v23 = vmax.f32 %v1275_v52, %v1276_v55  ;;  %v1283_v57 = vrot.slane %v1282_v56, 2 }
 0xea0   :  { %v1278_v58 = vrot.slane %v1277_v23, 1  ;;  %v1284_v60 = vmax.f32 %v1282_v56, %v1283_v57 }
 0xea2   :  { %v1279_v27 = vmax.f32 %v1277_v23, %v1278_v58  ;;  %v1285_v5 = vrot.slane %v1284_v60, 1 }
 0xea4   :  { %v1287_v0 = vsub.f32 %v1271_v45, %v1279_v27  ;;  %v1286_v62 = vmax.f32 %v1284_v60, %v1285_v5 }
 0xea6   :  { %v1289_v31 = vmul.f32 1.442695, %v1287_v0  ;;  %v1288_v63 = vsub.f32 %v1272_v50, %v1286_v62 }
 0xea8   :  { %2214 = vpow2.f32 %v1289_v31  ;;  %v1291_v1 = vmul.f32 1.442695, %v1288_v63 }
 0xeaa   :  { %2216 = vpow2.f32 %v1291_v1 }
 0xeb2   :  { %v2215_v3 = vpop.eup %2214 }
 0xeb3   :  { %v1293_v4 = vsel %vm1040_vm9, %v2215_v3, 0.0 }
 0xeb4   :  { %v2217_v6 = vpop.eup %2216  ;;  %v1295_v7 = vsel %vm1044_vm10, %v1293_v4, 0.0 }
 0xeb5   :  { %v1296_v9 = vrot.slane %v1295_v7, 4  ;;  %v1294_v10 = vsel %vm1041_vm11, %v2217_v6, 0.0 }
 0xeb6   :  { %v1302_v11 = vsel %vm1044_vm10, %v1294_v10, 0.0 }
 0xeb7   :  { %v1297_v12 = vadd.f32 %v1296_v9, %v1295_v7  ;;  %v1303_v13 = vrot.slane %v1302_v11, 4 }
 0xeb9   :  { %v1298_v14 = vrot.slane %v1297_v12, 2  ;;  %v1304_v15 = vadd.f32 %v1303_v13, %v1302_v11 }
 0xebb   :  { %v1299_v16 = vadd.f32 %v1298_v14, %v1297_v12  ;;  %v1305_v17 = vrot.slane %v1304_v15, 2 }
 0xebd   :  { %v1300_v18 = vrot.slane %v1299_v16, 1  ;;  %v1306_v19 = vadd.f32 %v1305_v17, %v1304_v15 }
 0xebf   :  { %v1301_v20 = vadd.f32 %v1300_v18, %v1299_v16  ;;  %v1307_v33 = vrot.slane %v1306_v19, 1 }
 0xec1   :  { %v1309_v21 = vadd.f32 1e-09, %v1301_v20  ;;  %v1308_v24 = vadd.f32 %v1307_v33, %v1306_v19 }
 0xec3   :  { %2218 = vrcp.f32 %v1309_v21  ;;  %v1310_v25 = vadd.f32 1e-09, %v1308_v24 }
 0xec5   :  { %2220 = vrcp.f32 %v1310_v25 }
 0xecd   :  { %v2219_v29 = vpop.eup %2218 }
 0xece   :  { %v1313_v30 = vmul.f32 %v2219_v29, %v1293_v4 }
 0xecf   :  { %v2221_v32 = vpop.eup %2220 }
 0xed0   :  { %1317 = vperm.xlu0 %2160, %v1313_v30   ;;  %v1314_v34 = vmul.f32 %v2221_v32, %v1294_v10 }
 0xed2   :  { %1322 = vperm.xlu1 %2161, %v1314_v34  }
 0xed4   :  { %1341 = vrot.lane.b32.xlu0 %v2774_v26, %s2273_s10 }
 0xed8   :  { %1351 = vrot.lane.b32.xlu0 %v2774_v26, %s2275_s0 }
 0xf4f   :  { %v1318_v8 = vpop.permute.xlu0 %1317 }
 0xf50   :  { %v1325_v36 = vmul.f32 %v1318_v8, %v2727_v48 }
 0xf51   :  { %v1323_v38 = vpop.permute.xlu1 %1322 }
 0xf52   :  { %v1327_v39 = vsel %vm711_vm8, %v1325_v36, 0.0  ;;  %v1326_v40 = vmul.f32 %v1323_v38, %v2733_v53 }
 0xf53   :  { %v1328_v41 = vrot.slane %v1327_v39, 4  ;;  %v1342_v56 = vpop.permute.xlu0 %1341 }
 0xf54   :  { %v1334_v42 = vsel %vm711_vm8, %v1326_v40, 0.0 }
 0xf55   :  { %v1329_v43 = vadd.f32 %v1328_v41, %v1327_v39  ;;  %v1335_v44 = vrot.slane %v1334_v42, 4 }
 0xf57   :  { %v1330_v45 = vrot.slane %v1329_v43, 2  ;;  %v1336_v46 = vadd.f32 %v1335_v44, %v1334_v42  ;;  %v1352_v57 = vpop.permute.xlu0 %1351 }
 0xf59   :  { %v1331_v47 = vadd.f32 %v1330_v45, %v1329_v43  ;;  %v1337_v49 = vrot.slane %v1336_v46, 2 }
 0xf5b   :  { %v1332_v50 = vrot.slane %v1331_v47, 1  ;;  %v1338_v51 = vadd.f32 %v1337_v49, %v1336_v46 }
 0xf5d   :  { %v1339_v26 = vrot.slane %v1338_v51, 1  ;;  %v1333_v52 = vadd.f32 %v1332_v50, %v1331_v47 }
 0xf5f   :  { %v1340_v54 = vadd.f32 %v1339_v26, %v1338_v51 }
 0xf61   :  { %v1346_v55 = vsel %vm1118_vm12, %v1340_v54, %v1333_v52 }
 0xf62   :  { %1347 = vrot.lane.b32.xlu1 %v1346_v55, %s2273_s10 }
 0xfd4   :  { %v1348_v23 = vpop.permute.xlu1 %1347 }
 0xfd5   :  { %v1350_v58 = vsel %vm711_vm8, %v1342_v56, %v1348_v23 }
 0xfd6   :  { %v1354_v60 = vsel %vm1127_vm13, %v1350_v58, %v1352_v57 }
 0xfd7   :  { %1975 = vmatmul.mubr.msk.f32.vlgmr.msra.gmra.mrb[12].mxu1 %vm897_vm14, %v1354_v60 }
0x10aa   :  { %v1424_v27 = vpop.f32.mrb[12].mxu1 }
0x10ab   :  { %v1425_v5 = vadd.f32 %v2679_v37, %v1424_v27  ;;  %v1976_v0 = vpop.f32.mrb[13].mxu1 }
0x10ad   :  { %2222 = vtanh.f32 %v1425_v5  ;;  %v1714_v31 = vmul.f32 -1.442695, %v1425_v5 }
0x10af   :  { %2224 = vpow2.f32 %v1714_v31 }
0x10b7   :  { %v2223_v62 = vpop.eup %2222 }
0x10b8   :  { %1437 = vrot.lane.b32.xlu1 %v2223_v62, %s2272_s9 }
0x10b9   :  { %v2225_v63 = vpop.eup %2224 }
0x10ba   :  { %v1431_v1 = vadd.f32 1.0, %v2225_v63 }
0x10bc   :  { %2226 = vrcp.f32 %v1431_v1 }
0x10c6   :  { %v2227_v3 = vpop.eup %2226 }
0x10c7   :  { %v1435_v7 = vmul.f32 %v2227_v3, %v2770_v22 }
0x112a   :  { %v1438_v4 = vpop.permute.xlu1 %1437 }
0x112b   :  { %v1440_v6 = vmul.f32 %v2227_v3, %v1438_v4 }
0x112d   :  { %1442 = vrot.lane.b32.xlu0 %v1440_v6, %s2273_s10 }
0x119f   :  { %v1443_v9 = vpop.permute.xlu0 %1442 }
0x11a0   :  { %v1445_v10 = vadd.f32 %v1443_v9, %v1435_v7 }
0x11a2   :  { %2228 = vtanh.f32 %v1445_v10 }
0x11ac   :  { %v2229_v37 = vpop.eup %2228 }
0x11ad   :  { %1448 = vrot.lane.b32.xlu1 %v2229_v37, %s2272_s9  ;;  %v1577_v37 = vld [vmem:[%s2898_s2 + $0x180] sm:$0xff] }
0x121f   :  { %v1449_v11 = vpop.permute.xlu1 %1448 }
0x1220   :  { %v2818_v12 = vmul.f32 %v2227_v3, %v1449_v11  ;;  %v1578_v11 = vld [vmem:[%s2898_s2 + $0x188] sm:$0xff] }
0x1222   :  { %v1459_v13 = vrot.slane %v2818_v12, %v2708_v28 }
0x1224   :  { %v1460_v14 = vcombine.high %v1459_v13, %v1459_v13  ;;  %v1467_v15 = vrot.slane %v1459_v13, %v2708_v28  ;;  %v1579_v13 = vld [vmem:[%s2898_s2 + $0x190] sm:$0xff] }
0x1226   :  { %v1478_v16 = vrot.slane %v1467_v15, %v2715_v35  ;;  %v1474_v17 = vrot.slane %v1460_v14, %v2708_v28  ;;  %v2134_v14 = vpack.c.bf16 %v1578_v11, %v1577_v37  ;;  %v1580_v15 = vld [vmem:[%s2898_s2 + $0x198] sm:$0xff] }
0x1228   :  { %1483 = vrot.lane.b32.xlu0 %v1478_v16, %s2273_s10  ;;  %v1482_v22 = vrot.slane %v1474_v17, %v2715_v35  ;;  %2135 = vmatpush3.bf16.msra.mxu0 %v2134_v14  ;;  %v2137_v16 = vpack.c.bf16 %v1580_v15, %v1579_v13  ;;  %v1582_v17 = vld [vmem:[%s2898_s2 + $0x1a8] sm:$0xff] }
0x1229   :  { %2136 = vmatprep.subr.bf16.mxu0 %v2265_v61 }
0x122a   :  { %1485 = vrot.lane.b32.xlu1 %v1482_v22, %s2273_s10 }
0x122c   :  { %2138 = vmatpush3.bf16.msra.mxu0 %v2137_v16 }
0x122d   :  { %2139 = vmatprep.subr.bf16.mxu0 %v2265_v61 }
0x129a   :  { %v1484_v18 = vpop.permute.xlu0 %1483 }
0x129b   :  { %v1489_v19 = vmul.f32 %v1484_v18, %v2727_v48  ;;  %v1583_v18 = vld [vmem:[%s2898_s2 + $0x1b0] sm:$0xff] }
0x129c   :  { %v1486_v20 = vpop.permute.xlu1 %1485 }
0x129d   :  { %v1490_v33 = vmul.f32 %v1486_v20, %v2733_v53  ;;  %v1491_v21 = vsel %vm711_vm8, %v1489_v19, 0.0  ;;  %v1584_v19 = vld [vmem:[%s2898_s2 + $0x1b8] sm:$0xff] }
0x129e   :  { %1492 = vadd.xlane.f32.xlu0 %v1491_v21  ;;  %v2143_v20 = vpack.c.bf16 %v1584_v19, %v1583_v18 }
0x129f   :  { %v1494_v24 = vsel %vm711_vm8, %v1490_v33, 0.0 }
0x12a0   :  { %1495 = vadd.xlane.f32.xlu1 %v1494_v24 }
0x132b   :  { %v1493_v25 = vpop.xlane.xlu0 %1492 }
0x132c   :  { %v1497_v28 = vsel %vm1040_vm9, %v1493_v25, -1e+09 }
0x132d   :  { %v1499_v35 = vsel %vm1044_vm10, %v1497_v28, -inf  ;;  %v1496_v29 = vpop.xlane.xlu1 %1495 }
0x132e   :  { %v1500_v30 = vrot.slane %v1499_v35, 4  ;;  %v1498_v32 = vsel %vm1041_vm11, %v1496_v29, -1e+09 }
0x132f   :  { %v1506_v34 = vsel %vm1044_vm10, %v1498_v32, -inf }
0x1330   :  { %v1501_v8 = vmax.f32 %v1499_v35, %v1500_v30  ;;  %v1507_v36 = vrot.slane %v1506_v34, 4 }
0x1332   :  { %v1502_v38 = vrot.slane %v1501_v8, 2  ;;  %v1508_v39 = vmax.f32 %v1506_v34, %v1507_v36 }
0x1334   :  { %v1503_v40 = vmax.f32 %v1501_v8, %v1502_v38  ;;  %v1509_v41 = vrot.slane %v1508_v39, 2 }
0x1336   :  { %v1504_v42 = vrot.slane %v1503_v40, 1  ;;  %v1510_v43 = vmax.f32 %v1508_v39, %v1509_v41 }
0x1338   :  { %v1505_v44 = vmax.f32 %v1503_v40, %v1504_v42  ;;  %v1511_v45 = vrot.slane %v1510_v43, 1 }
0x133a   :  { %v1513_v46 = vsub.f32 %v1497_v28, %v1505_v44  ;;  %v1512_v47 = vmax.f32 %v1510_v43, %v1511_v45  ;;  %v1715_v45 = vld [vmem:[%s2898_s2 + $0x1c2] ss:$0 sm:$0xff] }
0x133c   :  { %v1515_v49 = vmul.f32 1.442695, %v1513_v46  ;;  %v1514_v50 = vsub.f32 %v1498_v32, %v1512_v47 }
0x133e   :  { %2230 = vpow2.f32 %v1515_v49  ;;  %v1517_v51 = vmul.f32 1.442695, %v1514_v50 }
0x1340   :  { %2232 = vpow2.f32 %v1517_v51 }
0x1348   :  { %v2231_v26 = vpop.eup %2230 }
0x1349   :  { %v1519_v52 = vsel %vm1040_vm9, %v2231_v26, 0.0 }
0x134a   :  { %v2233_v54 = vpop.eup %2232  ;;  %v1521_v55 = vsel %vm1044_vm10, %v1519_v52, 0.0 }
0x134b   :  { %v1522_v56 = vrot.slane %v1521_v55, 4  ;;  %v1520_v23 = vsel %vm1041_vm11, %v2233_v54, 0.0 }
0x134c   :  { %v1528_v57 = vsel %vm1044_vm10, %v1520_v23, 0.0 }
0x134d   :  { %v1523_v58 = vadd.f32 %v1522_v56, %v1521_v55  ;;  %v1529_v60 = vrot.slane %v1528_v57, 4 }
0x134f   :  { %v1524_v27 = vrot.slane %v1523_v58, 2  ;;  %v1530_v5 = vadd.f32 %v1529_v60, %v1528_v57 }
0x1351   :  { %v1525_v0 = vadd.f32 %v1524_v27, %v1523_v58  ;;  %v1531_v62 = vrot.slane %v1530_v5, 2 }
0x1353   :  { %v1526_v31 = vrot.slane %v1525_v0, 1  ;;  %v1532_v63 = vadd.f32 %v1531_v62, %v1530_v5 }
0x1355   :  { %v1527_v1 = vadd.f32 %v1526_v31, %v1525_v0  ;;  %v1533_v59 = vrot.slane %v1532_v63, 1 }
0x1357   :  { %v1535_v3 = vadd.f32 1e-09, %v1527_v1  ;;  %v1534_v4 = vadd.f32 %v1533_v59, %v1532_v63 }
0x1359   :  { %2234 = vrcp.f32 %v1535_v3  ;;  %v1536_v6 = vadd.f32 1e-09, %v1534_v4 }
0x135b   :  { %2236 = vrcp.f32 %v1536_v6 }
0x1363   :  { %v2235_v7 = vpop.eup %2234 }
0x1364   :  { %v1539_v2 = vmul.f32 %v2235_v7, %v1519_v52 }
0x1365   :  { %v2237_v9 = vpop.eup %2236 }
0x1366   :  { %1543 = vperm.xlu0 %2160, %v1539_v2   ;;  %v1540_v10 = vmul.f32 %v2237_v9, %v1520_v23 }
0x1368   :  { %1548 = vperm.xlu1 %2161, %v1540_v10  }
0x136a   :  { %1567 = vrot.lane.b32.xlu0 %v2818_v12, %s2273_s10  ;;  %v1581_v12 = vld [vmem:[%s2898_s2 + $0x1a0] sm:$0xff] }
0x136b   :  { %v2140_v22 = vpack.c.bf16 %v1582_v17, %v1581_v12 }
0x136d   :  { %2141 = vmatpush3.bf16.msra.mxu0 %v2140_v22 }
0x136e   :  { %2142 = vmatprep.subr.bf16.mxu0 %v2265_v61 }
0x1371   :  { %2144 = vmatpush3.bf16.msra.mxu0 %v2143_v20 }
0x13e5   :  { %v1544_v33 = vpop.permute.xlu0 %1543 }
0x13e6   :  { %v1551_v21 = vmul.f32 %v1544_v33, %v2727_v48 }
0x13e7   :  { %v1549_v24 = vpop.permute.xlu1 %1548 }
0x13e8   :  { %v1553_v25 = vsel %vm711_vm8, %v1551_v21, 0.0  ;;  %v1552_v28 = vmul.f32 %v1549_v24, %v2733_v53 }
0x13e9   :  { %v1554_v35 = vrot.slane %v1553_v25, 4  ;;  %v1568_v43 = vpop.permute.xlu0 %1567 }
0x13ea   :  { %v1560_v29 = vsel %vm711_vm8, %v1552_v28, 0.0 }
0x13eb   :  { %v1555_v30 = vadd.f32 %v1554_v35, %v1553_v25  ;;  %v1561_v32 = vrot.slane %v1560_v29, 4 }
0x13ed   :  { %v1556_v34 = vrot.slane %v1555_v30, 2  ;;  %v1562_v8 = vadd.f32 %v1561_v32, %v1560_v29 }
0x13ef   :  { %v1557_v36 = vadd.f32 %v1556_v34, %v1555_v30  ;;  %v1563_v38 = vrot.slane %v1562_v8, 2 }
0x13f1   :  { %v1558_v39 = vrot.slane %v1557_v36, 1  ;;  %v1564_v61 = vadd.f32 %v1563_v38, %v1562_v8 }
0x13f3   :  { %v1565_v40 = vrot.slane %v1564_v61, 1  ;;  %v1559_v41 = vadd.f32 %v1558_v39, %v1557_v36 }
0x13f5   :  { %v1566_v42 = vadd.f32 %v1565_v40, %v1564_v61 }
0x13f7   :  { %v1572_v48 = vsel %vm1118_vm12, %v1566_v42, %v1559_v41 }
0x13f8   :  { %1573 = vrot.lane.b32.xlu1 %v1572_v48, %s2273_s10 }
0x146a   :  { %v1574_v53 = vpop.permute.xlu1 %1573 }
0x146b   :  { %v1576_v44 = vsel %vm711_vm8, %v1568_v43, %v1574_v53 }
0x146c   :  { %1994 = vmatmul.mubr.msk.f32.vlgmr.msra.gmra.mrb[38].mxu0 %vm1127_vm13, %v1576_v44 }
0x153f   :  { %v1659_v46 = vpop.f32.mrb[38].mxu0 }
0x1540   :  { %v1660_v47 = vadd.f32 %v1715_v45, %v1659_v46  ;;  %v1995_v49 = vpop.f32.mrb[39].mxu0 }
0x1542   :  { %1663 = vst [vmem:[#allocation2] sm:$0x3] %v1660_v47 }
0x1543   :  { %2249 = shalt.err (!%p2246_p4)
}
0x1544   :  { %s2250_s10 = scalar_lea.hbm %s2899_s3, 32 }
0x1545   :  { %p2251_p5 = scmp.ne.s32.totalorder %s2899_s3, %s2250_s10  ;;  %p2254_p6 = scmp.lt.u32.totalorder %s2250_s10, %s2899_s3 }
0x1547   :  { %p2256_p7 = pnand %p2254_p6, %p2251_p5 }
0x1549   :  { %2259 = shalt.err (!%p2256_p7)
}
0x154a   :  { %1673 = dma.vmem_to_hbm [thread:$0]  %s1671_s6, 32, %s2899_s3, [#allocation3]  }
0x154b   :  { %2260 = dma.done.wait [#allocation3], 32  }
0x154c   :  { %2261 = vsyncadd [#allocation3], 4294967264 }
0x154d   :  { %1677 = vsyncpa [#allocation3], 1 }

</bundles_post_ra>
